<compile_context>
chip_gen: v7x
topology: tpu7x:2x2x1
jax: 0.10.0
libtpu: 0.0.40
codegen_flags: <defaults>
</compile_context>

<pallas_src>
import functools

import jax
import jax.numpy as jnp
from jax.experimental import pallas as pl
from jax.experimental.pallas import tpu as pltpu


def _garage_kernel(params_ref, x_ref, w_ref, b_ref, o_ref, hid_ref, *, t_in):
    """params_ref: SMEM (12,) f32   [w_ih(i,f,g,o), w_hh(i,f,g,o), b(i,f,g,o)]
       x_ref:      VMEM (t_in, TN)      time on sublanes, rows on lanes
       w_ref:      VMEM (t_out, t_in)   torch Linear weight (used as-is)
       b_ref:      VMEM (t_out, 1)
       o_ref:      VMEM (t_out, TN)
       hid_ref:    VMEM scratch (t_in, TN)
    """
    x = x_ref[...].astype(jnp.float32)            # (t_in, TN)
    tn = x.shape[1]

    # PyTorch LSTM gate order: i, f, g, o
    w_ii, w_if, w_ig, w_io = (params_ref[0], params_ref[1],
                              params_ref[2], params_ref[3])
    w_hi, w_hf, w_hg, w_ho = (params_ref[4], params_ref[5],
                              params_ref[6], params_ref[7])
    b_i, b_f, b_g, b_o = (params_ref[8], params_ref[9],
                          params_ref[10], params_ref[11])

    # Hoist x-dependent pre-activations out of the recurrence (full-tile VPU).
    a_i = w_ii * x + b_i                          # (t_in, TN)
    a_f = w_if * x + b_f
    a_g = w_ig * x + b_g
    a_o = w_io * x + b_o

    h = jnp.zeros((1, tn), jnp.float32)
    c = jnp.zeros((1, tn), jnp.float32)

    # Static unroll is fine while t_in stays small (<= ~16); hidden states go
    # straight into VMEM scratch rows (no lane-concat, bounded live ranges).
    for t in range(t_in):
        i_g = jax.nn.sigmoid(a_i[t:t + 1, :] + w_hi * h)
        f_g = jax.nn.sigmoid(a_f[t:t + 1, :] + w_hf * h)
        g_g = jnp.tanh(a_g[t:t + 1, :] + w_hg * h)
        o_g = jax.nn.sigmoid(a_o[t:t + 1, :] + w_ho * h)
        c = f_g * c + i_g * g_g
        h = o_g * jnp.tanh(c)
        hid_ref[t:t + 1, :] = h

    hidden = hid_ref[...]                         # (t_in, TN)

    # Linear: (t_out, t_in) @ (t_in, TN) -> lane-dense (t_out, TN).
    out = jnp.dot(w_ref[...], hidden,
                  preferred_element_type=jnp.float32) + b_ref[...]
    o_ref[...] = out.astype(o_ref.dtype)


def graph_garage_forward(x, lstm_params, w_lin, b_lin, *, tile_lanes=256):
    """x: (N, t_in) f32.  lstm_params: (12,) f32.
       w_lin: torch-shaped (t_out, t_in).  b_lin: (t_out,)."""
    n, t_in = x.shape
    t_out = w_lin.shape[0]

    # Rows -> lanes: transpose to (t_in, N) and pad lanes to a tile multiple.
    # Keep at least 2 grid tiles so both TensorCores get work on v7x.
    num_tiles = max(pl.cdiv(n, tile_lanes), 2)
    n_pad = num_tiles * tile_lanes
    x_t = jnp.transpose(x.astype(jnp.float32))              # (t_in, N)
    if n_pad != n:
        x_t = jnp.pad(x_t, ((0, 0), (0, n_pad - n)))

    w = w_lin.astype(jnp.float32)                            # (t_out, t_in)
    b = b_lin.reshape(t_out, 1).astype(jnp.float32)          # (t_out, 1)
    params = lstm_params.astype(jnp.float32)                 # (12,)

    kernel = functools.partial(_garage_kernel, t_in=t_in)

    grid_spec = pltpu.PrefetchScalarGridSpec(
        num_scalar_prefetch=0,
        grid=(num_tiles,),
        in_specs=[
            pl.BlockSpec(memory_space=pltpu.MemorySpace.SMEM),     # lstm params
            pl.BlockSpec((t_in, tile_lanes), lambda i: (0, i)),    # x (t_in, N)
            pl.BlockSpec((t_out, t_in), lambda i: (0, 0)),         # W
            pl.BlockSpec((t_out, 1), lambda i: (0, 0)),            # bias
        ],
        out_specs=pl.BlockSpec((t_out, tile_lanes), lambda i: (0, i)),
        scratch_shapes=[pltpu.VMEM((t_in, tile_lanes), jnp.float32)],
    )

    out_t = pl.pallas_call(
        kernel,
        out_shape=jax.ShapeDtypeStruct((t_out, n_pad), jnp.float32),
        grid_spec=grid_spec,
        compiler_params=pltpu.CompilerParams(
            dimension_semantics=("parallel",)),
    )(params, x_t, w, b)

    return jnp.transpose(out_t)[:n]                           # (N, t_out)


def _reference(x, lstm_params, w_lin, b_lin):
    """Pure-JAX reference of the torch forward (for validation)."""
    w_ih = lstm_params[0:4]
    w_hh = lstm_params[4:8]
    bias = lstm_params[8:12]

    def step(carry, xt):
        h, c = carry
        i = jax.nn.sigmoid(w_ih[0] * xt + w_hh[0] * h + bias[0])
        f = jax.nn.sigmoid(w_ih[1] * xt + w_hh[1] * h + bias[1])
        g = jnp.tanh(w_ih[2] * xt + w_hh[2] * h + bias[2])
        o = jax.nn.sigmoid(w_ih[3] * xt + w_hh[3] * h + bias[3])
        c = f * c + i * g
        h = o * jnp.tanh(c)
        return (h, c), h

    n = x.shape[0]
    init = (jnp.zeros((n,), jnp.float32), jnp.zeros((n,), jnp.float32))
    _, hs = jax.lax.scan(step, init, x.T)        # hs: (t_in, N)
    hidden = hs.T                                # (N, t_in)
    return hidden @ w_lin.T + b_lin


if __name__ == "__main__":
    # Module hyperparameters (small, consistent with the forward pass).
    batch, num_nodes, t_in, t_out = 2, 16, 8, 4
    n = batch * num_nodes                        # data.x rows

    key = jax.random.PRNGKey(0)
    k_x, k_ih, k_hh, k_bih, k_bhh, k_w, k_b = jax.random.split(key, 7)

    # data.x : (batch * width, t_in)
    x = jax.random.normal(k_x, (n, t_in), dtype=jnp.float32)

    # LSTM(1, 1) parameters: weight_ih (4,1), weight_hh (4,1), biases (4,)
    w_ih = jax.random.uniform(k_ih, (4,), jnp.float32, -1.0, 1.0)
    w_hh = jax.random.uniform(k_hh, (4,), jnp.float32, -1.0, 1.0)
    b_ih = jax.random.uniform(k_bih, (4,), jnp.float32, -1.0, 1.0)
    b_hh = jax.random.uniform(k_bhh, (4,), jnp.float32, -1.0, 1.0)
    lstm_params = jnp.concatenate([w_ih, w_hh, b_ih + b_hh])   # (12,)

    # Linear(t_in, t_out): weight (t_out, t_in), bias (t_out,)
    bound = 1.0 / jnp.sqrt(jnp.float32(t_in))
    w_lin = jax.random.uniform(k_w, (t_out, t_in), jnp.float32, -bound, bound)
    b_lin = jax.random.uniform(k_b, (t_out,), jnp.float32, -bound, bound)

    out = graph_garage_forward(x, lstm_params, w_lin, b_lin, tile_lanes=256)
    out = jax.block_until_ready(out)

    ref = _reference(x, lstm_params, w_lin, b_lin)
    assert out.shape == (n, t_out)
    assert jnp.allclose(out, ref, atol=1e-5, rtol=1e-5), (
        float(jnp.max(jnp.abs(out - ref))))

    print("KERNEL_OK")
</pallas_src>

<mosaic_0001>
module attributes {stable_mosaic.version = 11 : i64} {
  func.func @_garage_kernel(%arg0: i32, %arg1: memref<12xf32, #tpu.memory_space<smem>>, %arg2: memref<8x256xf32, #tpu.memory_space<vmem>>, %arg3: memref<4x8xf32, #tpu.memory_space<vmem>>, %arg4: memref<4x1xf32, #tpu.memory_space<vmem>>, %arg5: memref<4x256xf32, #tpu.memory_space<vmem>>, %arg6: memref<8x256xf32, #tpu.memory_space<vmem>>) attributes {dimension_semantics = [#tpu.dimension_semantics<parallel>], iteration_bounds = array<i64: 2>, scalar_prefetch = 0 : i64, scratch_operands = 1 : i64, tpu.core_type = #tpu.core_type<tc>, window_params = [{transform_indices = @transform_0, window_bounds = array<i64: 12>}, {transform_indices = @transform_1, window_bounds = array<i64: 8, 256>}, {pipeline_mode = #tpu.pipeline_mode<synchronous>, transform_indices = @transform_2, window_bounds = array<i64: 4, 8>}, {pipeline_mode = #tpu.pipeline_mode<synchronous>, transform_indices = @transform_3, window_bounds = array<i64: 4, 1>}, {transform_indices = @transform_4, window_bounds = array<i64: 4, 256>}]} {
    %c0 = arith.constant 0 : index
    %c0_0 = arith.constant 0 : index
    %0 = vector.load %arg2[%c0, %c0_0] : memref<8x256xf32, #tpu.memory_space<vmem>>, vector<8x256xf32>
    %c0_1 = arith.constant 0 : index
    %1 = memref.load %arg1[%c0_1] : memref<12xf32, #tpu.memory_space<smem>>
    %c1 = arith.constant 1 : index
    %2 = memref.load %arg1[%c1] : memref<12xf32, #tpu.memory_space<smem>>
    %c2 = arith.constant 2 : index
    %3 = memref.load %arg1[%c2] : memref<12xf32, #tpu.memory_space<smem>>
    %c3 = arith.constant 3 : index
    %4 = memref.load %arg1[%c3] : memref<12xf32, #tpu.memory_space<smem>>
    %c4 = arith.constant 4 : index
    %5 = memref.load %arg1[%c4] : memref<12xf32, #tpu.memory_space<smem>>
    %c5 = arith.constant 5 : index
    %6 = memref.load %arg1[%c5] : memref<12xf32, #tpu.memory_space<smem>>
    %c6 = arith.constant 6 : index
    %7 = memref.load %arg1[%c6] : memref<12xf32, #tpu.memory_space<smem>>
    %c7 = arith.constant 7 : index
    %8 = memref.load %arg1[%c7] : memref<12xf32, #tpu.memory_space<smem>>
    %c8 = arith.constant 8 : index
    %9 = memref.load %arg1[%c8] : memref<12xf32, #tpu.memory_space<smem>>
    %c9 = arith.constant 9 : index
    %10 = memref.load %arg1[%c9] : memref<12xf32, #tpu.memory_space<smem>>
    %c10 = arith.constant 10 : index
    %11 = memref.load %arg1[%c10] : memref<12xf32, #tpu.memory_space<smem>>
    %c11 = arith.constant 11 : index
    %12 = memref.load %arg1[%c11] : memref<12xf32, #tpu.memory_space<smem>>
    %13 = vector.broadcast %1 : f32 to vector<8x256xf32>
    %14 = arith.mulf %13, %0 : vector<8x256xf32>
    %15 = vector.broadcast %9 : f32 to vector<8x256xf32>
    %16 = arith.addf %14, %15 : vector<8x256xf32>
    %17 = vector.broadcast %2 : f32 to vector<8x256xf32>
    %18 = arith.mulf %17, %0 : vector<8x256xf32>
    %19 = vector.broadcast %10 : f32 to vector<8x256xf32>
    %20 = arith.addf %18, %19 : vector<8x256xf32>
    %21 = vector.broadcast %3 : f32 to vector<8x256xf32>
    %22 = arith.mulf %21, %0 : vector<8x256xf32>
    %23 = vector.broadcast %11 : f32 to vector<8x256xf32>
    %24 = arith.addf %22, %23 : vector<8x256xf32>
    %25 = vector.broadcast %4 : f32 to vector<8x256xf32>
    %26 = arith.mulf %25, %0 : vector<8x256xf32>
    %27 = vector.broadcast %12 : f32 to vector<8x256xf32>
    %28 = arith.addf %26, %27 : vector<8x256xf32>
    %cst = arith.constant 0.000000e+00 : f32
    %29 = vector.broadcast %cst : f32 to vector<1x256xf32>
    %cst_2 = arith.constant 0.000000e+00 : f32
    %30 = vector.broadcast %cst_2 : f32 to vector<1x256xf32>
    %31 = vector.extract_strided_slice %16 {offsets = [0, 0], sizes = [1, 256], strides = [1, 1]} : vector<8x256xf32> to vector<1x256xf32>
    %32 = vector.broadcast %5 : f32 to vector<1x256xf32>
    %33 = arith.mulf %32, %29 : vector<1x256xf32>
    %34 = arith.addf %31, %33 : vector<1x256xf32>
    %35 = arith.negf %34 : vector<1x256xf32>
    %36 = math.exp %35 : vector<1x256xf32>
    %cst_3 = arith.constant 1.000000e+00 : f32
    %37 = vector.broadcast %cst_3 : f32 to vector<1x256xf32>
    %38 = arith.addf %37, %36 : vector<1x256xf32>
    %39 = arith.divf %37, %38 : vector<1x256xf32>
    %40 = vector.extract_strided_slice %20 {offsets = [0, 0], sizes = [1, 256], strides = [1, 1]} : vector<8x256xf32> to vector<1x256xf32>
    %41 = vector.broadcast %6 : f32 to vector<1x256xf32>
    %42 = arith.mulf %41, %29 : vector<1x256xf32>
    %43 = arith.addf %40, %42 : vector<1x256xf32>
    %44 = arith.negf %43 : vector<1x256xf32>
    %45 = math.exp %44 : vector<1x256xf32>
    %cst_4 = arith.constant 1.000000e+00 : f32
    %46 = vector.broadcast %cst_4 : f32 to vector<1x256xf32>
    %47 = arith.addf %46, %45 : vector<1x256xf32>
    %48 = arith.divf %46, %47 : vector<1x256xf32>
    %49 = vector.extract_strided_slice %24 {offsets = [0, 0], sizes = [1, 256], strides = [1, 1]} : vector<8x256xf32> to vector<1x256xf32>
    %50 = vector.broadcast %7 : f32 to vector<1x256xf32>
    %51 = arith.mulf %50, %29 : vector<1x256xf32>
    %52 = arith.addf %49, %51 : vector<1x256xf32>
    %53 = math.tanh %52 : vector<1x256xf32>
    %54 = vector.extract_strided_slice %28 {offsets = [0, 0], sizes = [1, 256], strides = [1, 1]} : vector<8x256xf32> to vector<1x256xf32>
    %55 = vector.broadcast %8 : f32 to vector<1x256xf32>
    %56 = arith.mulf %55, %29 : vector<1x256xf32>
    %57 = arith.addf %54, %56 : vector<1x256xf32>
    %58 = arith.negf %57 : vector<1x256xf32>
    %59 = math.exp %58 : vector<1x256xf32>
    %cst_5 = arith.constant 1.000000e+00 : f32
    %60 = vector.broadcast %cst_5 : f32 to vector<1x256xf32>
    %61 = arith.addf %60, %59 : vector<1x256xf32>
    %62 = arith.divf %60, %61 : vector<1x256xf32>
    %63 = arith.mulf %48, %30 : vector<1x256xf32>
    %64 = arith.mulf %39, %53 : vector<1x256xf32>
    %65 = arith.addf %63, %64 : vector<1x256xf32>
    %66 = math.tanh %65 : vector<1x256xf32>
    %67 = arith.mulf %62, %66 : vector<1x256xf32>
    %c0_6 = arith.constant 0 : index
    %c0_7 = arith.constant 0 : index
    %68 = vector.load %arg6[%c0_6, %c0_7] : memref<8x256xf32, #tpu.memory_space<vmem>>, vector<1x256xf32>
    tpu.vector_store %arg6[%c0_6, %c0_7], %67 {strides = array<i32>} : memref<8x256xf32, #tpu.memory_space<vmem>>, vector<1x256xf32>,
    %69 = vector.extract_strided_slice %16 {offsets = [1, 0], sizes = [1, 256], strides = [1, 1]} : vector<8x256xf32> to vector<1x256xf32>
    %70 = vector.broadcast %5 : f32 to vector<1x256xf32>
    %71 = arith.mulf %70, %67 : vector<1x256xf32>
    %72 = arith.addf %69, %71 : vector<1x256xf32>
    %73 = arith.negf %72 : vector<1x256xf32>
    %74 = math.exp %73 : vector<1x256xf32>
    %cst_8 = arith.constant 1.000000e+00 : f32
    %75 = vector.broadcast %cst_8 : f32 to vector<1x256xf32>
    %76 = arith.addf %75, %74 : vector<1x256xf32>
    %77 = arith.divf %75, %76 : vector<1x256xf32>
    %78 = vector.extract_strided_slice %20 {offsets = [1, 0], sizes = [1, 256], strides = [1, 1]} : vector<8x256xf32> to vector<1x256xf32>
    %79 = vector.broadcast %6 : f32 to vector<1x256xf32>
    %80 = arith.mulf %79, %67 : vector<1x256xf32>
    %81 = arith.addf %78, %80 : vector<1x256xf32>
    %82 = arith.negf %81 : vector<1x256xf32>
    %83 = math.exp %82 : vector<1x256xf32>
    %cst_9 = arith.constant 1.000000e+00 : f32
    %84 = vector.broadcast %cst_9 : f32 to vector<1x256xf32>
    %85 = arith.addf %84, %83 : vector<1x256xf32>
    %86 = arith.divf %84, %85 : vector<1x256xf32>
    %87 = vector.extract_strided_slice %24 {offsets = [1, 0], sizes = [1, 256], strides = [1, 1]} : vector<8x256xf32> to vector<1x256xf32>
    %88 = vector.broadcast %7 : f32 to vector<1x256xf32>
    %89 = arith.mulf %88, %67 : vector<1x256xf32>
    %90 = arith.addf %87, %89 : vector<1x256xf32>
    %91 = math.tanh %90 : vector<1x256xf32>
    %92 = vector.extract_strided_slice %28 {offsets = [1, 0], sizes = [1, 256], strides = [1, 1]} : vector<8x256xf32> to vector<1x256xf32>
    %93 = vector.broadcast %8 : f32 to vector<1x256xf32>
    %94 = arith.mulf %93, %67 : vector<1x256xf32>
    %95 = arith.addf %92, %94 : vector<1x256xf32>
    %96 = arith.negf %95 : vector<1x256xf32>
    %97 = math.exp %96 : vector<1x256xf32>
    %cst_10 = arith.constant 1.000000e+00 : f32
    %98 = vector.broadcast %cst_10 : f32 to vector<1x256xf32>
    %99 = arith.addf %98, %97 : vector<1x256xf32>
    %100 = arith.divf %98, %99 : vector<1x256xf32>
    %101 = arith.mulf %86, %65 : vector<1x256xf32>
    %102 = arith.mulf %77, %91 : vector<1x256xf32>
    %103 = arith.addf %101, %102 : vector<1x256xf32>
    %104 = math.tanh %103 : vector<1x256xf32>
    %105 = arith.mulf %100, %104 : vector<1x256xf32>
    %c1_11 = arith.constant 1 : index
    %c0_12 = arith.constant 0 : index
    %106 = vector.load %arg6[%c1_11, %c0_12] : memref<8x256xf32, #tpu.memory_space<vmem>>, vector<1x256xf32>
    tpu.vector_store %arg6[%c1_11, %c0_12], %105 {strides = array<i32>} : memref<8x256xf32, #tpu.memory_space<vmem>>, vector<1x256xf32>,
    %107 = vector.extract_strided_slice %16 {offsets = [2, 0], sizes = [1, 256], strides = [1, 1]} : vector<8x256xf32> to vector<1x256xf32>
    %108 = vector.broadcast %5 : f32 to vector<1x256xf32>
    %109 = arith.mulf %108, %105 : vector<1x256xf32>
    %110 = arith.addf %107, %109 : vector<1x256xf32>
    %111 = arith.negf %110 : vector<1x256xf32>
    %112 = math.exp %111 : vector<1x256xf32>
    %cst_13 = arith.constant 1.000000e+00 : f32
    %113 = vector.broadcast %cst_13 : f32 to vector<1x256xf32>
    %114 = arith.addf %113, %112 : vector<1x256xf32>
    %115 = arith.divf %113, %114 : vector<1x256xf32>
    %116 = vector.extract_strided_slice %20 {offsets = [2, 0], sizes = [1, 256], strides = [1, 1]} : vector<8x256xf32> to vector<1x256xf32>
    %117 = vector.broadcast %6 : f32 to vector<1x256xf32>
    %118 = arith.mulf %117, %105 : vector<1x256xf32>
    %119 = arith.addf %116, %118 : vector<1x256xf32>
    %120 = arith.negf %119 : vector<1x256xf32>
    %121 = math.exp %120 : vector<1x256xf32>
    %cst_14 = arith.constant 1.000000e+00 : f32
    %122 = vector.broadcast %cst_14 : f32 to vector<1x256xf32>
    %123 = arith.addf %122, %121 : vector<1x256xf32>
    %124 = arith.divf %122, %123 : vector<1x256xf32>
    %125 = vector.extract_strided_slice %24 {offsets = [2, 0], sizes = [1, 256], strides = [1, 1]} : vector<8x256xf32> to vector<1x256xf32>
    %126 = vector.broadcast %7 : f32 to vector<1x256xf32>
    %127 = arith.mulf %126, %105 : vector<1x256xf32>
    %128 = arith.addf %125, %127 : vector<1x256xf32>
    %129 = math.tanh %128 : vector<1x256xf32>
    %130 = vector.extract_strided_slice %28 {offsets = [2, 0], sizes = [1, 256], strides = [1, 1]} : vector<8x256xf32> to vector<1x256xf32>
    %131 = vector.broadcast %8 : f32 to vector<1x256xf32>
    %132 = arith.mulf %131, %105 : vector<1x256xf32>
    %133 = arith.addf %130, %132 : vector<1x256xf32>
    %134 = arith.negf %133 : vector<1x256xf32>
    %135 = math.exp %134 : vector<1x256xf32>
    %cst_15 = arith.constant 1.000000e+00 : f32
    %136 = vector.broadcast %cst_15 : f32 to vector<1x256xf32>
    %137 = arith.addf %136, %135 : vector<1x256xf32>
    %138 = arith.divf %136, %137 : vector<1x256xf32>
    %139 = arith.mulf %124, %103 : vector<1x256xf32>
    %140 = arith.mulf %115, %129 : vector<1x256xf32>
    %141 = arith.addf %139, %140 : vector<1x256xf32>
    %142 = math.tanh %141 : vector<1x256xf32>
    %143 = arith.mulf %138, %142 : vector<1x256xf32>
    %c2_16 = arith.constant 2 : index
    %c0_17 = arith.constant 0 : index
    %144 = vector.load %arg6[%c2_16, %c0_17] : memref<8x256xf32, #tpu.memory_space<vmem>>, vector<1x256xf32>
    tpu.vector_store %arg6[%c2_16, %c0_17], %143 {strides = array<i32>} : memref<8x256xf32, #tpu.memory_space<vmem>>, vector<1x256xf32>,
    %145 = vector.extract_strided_slice %16 {offsets = [3, 0], sizes = [1, 256], strides = [1, 1]} : vector<8x256xf32> to vector<1x256xf32>
    %146 = vector.broadcast %5 : f32 to vector<1x256xf32>
    %147 = arith.mulf %146, %143 : vector<1x256xf32>
    %148 = arith.addf %145, %147 : vector<1x256xf32>
    %149 = arith.negf %148 : vector<1x256xf32>
    %150 = math.exp %149 : vector<1x256xf32>
    %cst_18 = arith.constant 1.000000e+00 : f32
    %151 = vector.broadcast %cst_18 : f32 to vector<1x256xf32>
    %152 = arith.addf %151, %150 : vector<1x256xf32>
    %153 = arith.divf %151, %152 : vector<1x256xf32>
    %154 = vector.extract_strided_slice %20 {offsets = [3, 0], sizes = [1, 256], strides = [1, 1]} : vector<8x256xf32> to vector<1x256xf32>
    %155 = vector.broadcast %6 : f32 to vector<1x256xf32>
    %156 = arith.mulf %155, %143 : vector<1x256xf32>
    %157 = arith.addf %154, %156 : vector<1x256xf32>
    %158 = arith.negf %157 : vector<1x256xf32>
    %159 = math.exp %158 : vector<1x256xf32>
    %cst_19 = arith.constant 1.000000e+00 : f32
    %160 = vector.broadcast %cst_19 : f32 to vector<1x256xf32>
    %161 = arith.addf %160, %159 : vector<1x256xf32>
    %162 = arith.divf %160, %161 : vector<1x256xf32>
    %163 = vector.extract_strided_slice %24 {offsets = [3, 0], sizes = [1, 256], strides = [1, 1]} : vector<8x256xf32> to vector<1x256xf32>
    %164 = vector.broadcast %7 : f32 to vector<1x256xf32>
    %165 = arith.mulf %164, %143 : vector<1x256xf32>
    %166 = arith.addf %163, %165 : vector<1x256xf32>
    %167 = math.tanh %166 : vector<1x256xf32>
    %168 = vector.extract_strided_slice %28 {offsets = [3, 0], sizes = [1, 256], strides = [1, 1]} : vector<8x256xf32> to vector<1x256xf32>
    %169 = vector.broadcast %8 : f32 to vector<1x256xf32>
    %170 = arith.mulf %169, %143 : vector<1x256xf32>
    %171 = arith.addf %168, %170 : vector<1x256xf32>
    %172 = arith.negf %171 : vector<1x256xf32>
    %173 = math.exp %172 : vector<1x256xf32>
    %cst_20 = arith.constant 1.000000e+00 : f32
    %174 = vector.broadcast %cst_20 : f32 to vector<1x256xf32>
    %175 = arith.addf %174, %173 : vector<1x256xf32>
    %176 = arith.divf %174, %175 : vector<1x256xf32>
    %177 = arith.mulf %162, %141 : vector<1x256xf32>
    %178 = arith.mulf %153, %167 : vector<1x256xf32>
    %179 = arith.addf %177, %178 : vector<1x256xf32>
    %180 = math.tanh %179 : vector<1x256xf32>
    %181 = arith.mulf %176, %180 : vector<1x256xf32>
    %c3_21 = arith.constant 3 : index
    %c0_22 = arith.constant 0 : index
    %182 = vector.load %arg6[%c3_21, %c0_22] : memref<8x256xf32, #tpu.memory_space<vmem>>, vector<1x256xf32>
    tpu.vector_store %arg6[%c3_21, %c0_22], %181 {strides = array<i32>} : memref<8x256xf32, #tpu.memory_space<vmem>>, vector<1x256xf32>,
    %183 = vector.extract_strided_slice %16 {offsets = [4, 0], sizes = [1, 256], strides = [1, 1]} : vector<8x256xf32> to vector<1x256xf32>
    %184 = vector.broadcast %5 : f32 to vector<1x256xf32>
    %185 = arith.mulf %184, %181 : vector<1x256xf32>
    %186 = arith.addf %183, %185 : vector<1x256xf32>
    %187 = arith.negf %186 : vector<1x256xf32>
    %188 = math.exp %187 : vector<1x256xf32>
    %cst_23 = arith.constant 1.000000e+00 : f32
    %189 = vector.broadcast %cst_23 : f32 to vector<1x256xf32>
    %190 = arith.addf %189, %188 : vector<1x256xf32>
    %191 = arith.divf %189, %190 : vector<1x256xf32>
    %192 = vector.extract_strided_slice %20 {offsets = [4, 0], sizes = [1, 256], strides = [1, 1]} : vector<8x256xf32> to vector<1x256xf32>
    %193 = vector.broadcast %6 : f32 to vector<1x256xf32>
    %194 = arith.mulf %193, %181 : vector<1x256xf32>
    %195 = arith.addf %192, %194 : vector<1x256xf32>
    %196 = arith.negf %195 : vector<1x256xf32>
    %197 = math.exp %196 : vector<1x256xf32>
    %cst_24 = arith.constant 1.000000e+00 : f32
    %198 = vector.broadcast %cst_24 : f32 to vector<1x256xf32>
    %199 = arith.addf %198, %197 : vector<1x256xf32>
    %200 = arith.divf %198, %199 : vector<1x256xf32>
    %201 = vector.extract_strided_slice %24 {offsets = [4, 0], sizes = [1, 256], strides = [1, 1]} : vector<8x256xf32> to vector<1x256xf32>
    %202 = vector.broadcast %7 : f32 to vector<1x256xf32>
    %203 = arith.mulf %202, %181 : vector<1x256xf32>
    %204 = arith.addf %201, %203 : vector<1x256xf32>
    %205 = math.tanh %204 : vector<1x256xf32>
    %206 = vector.extract_strided_slice %28 {offsets = [4, 0], sizes = [1, 256], strides = [1, 1]} : vector<8x256xf32> to vector<1x256xf32>
    %207 = vector.broadcast %8 : f32 to vector<1x256xf32>
    %208 = arith.mulf %207, %181 : vector<1x256xf32>
    %209 = arith.addf %206, %208 : vector<1x256xf32>
    %210 = arith.negf %209 : vector<1x256xf32>
    %211 = math.exp %210 : vector<1x256xf32>
    %cst_25 = arith.constant 1.000000e+00 : f32
    %212 = vector.broadcast %cst_25 : f32 to vector<1x256xf32>
    %213 = arith.addf %212, %211 : vector<1x256xf32>
    %214 = arith.divf %212, %213 : vector<1x256xf32>
    %215 = arith.mulf %200, %179 : vector<1x256xf32>
    %216 = arith.mulf %191, %205 : vector<1x256xf32>
    %217 = arith.addf %215, %216 : vector<1x256xf32>
    %218 = math.tanh %217 : vector<1x256xf32>
    %219 = arith.mulf %214, %218 : vector<1x256xf32>
    %c4_26 = arith.constant 4 : index
    %c0_27 = arith.constant 0 : index
    %220 = vector.load %arg6[%c4_26, %c0_27] : memref<8x256xf32, #tpu.memory_space<vmem>>, vector<1x256xf32>
    tpu.vector_store %arg6[%c4_26, %c0_27], %219 {strides = array<i32>} : memref<8x256xf32, #tpu.memory_space<vmem>>, vector<1x256xf32>,
    %221 = vector.extract_strided_slice %16 {offsets = [5, 0], sizes = [1, 256], strides = [1, 1]} : vector<8x256xf32> to vector<1x256xf32>
    %222 = vector.broadcast %5 : f32 to vector<1x256xf32>
    %223 = arith.mulf %222, %219 : vector<1x256xf32>
    %224 = arith.addf %221, %223 : vector<1x256xf32>
    %225 = arith.negf %224 : vector<1x256xf32>
    %226 = math.exp %225 : vector<1x256xf32>
    %cst_28 = arith.constant 1.000000e+00 : f32
    %227 = vector.broadcast %cst_28 : f32 to vector<1x256xf32>
    %228 = arith.addf %227, %226 : vector<1x256xf32>
    %229 = arith.divf %227, %228 : vector<1x256xf32>
    %230 = vector.extract_strided_slice %20 {offsets = [5, 0], sizes = [1, 256], strides = [1, 1]} : vector<8x256xf32> to vector<1x256xf32>
    %231 = vector.broadcast %6 : f32 to vector<1x256xf32>
    %232 = arith.mulf %231, %219 : vector<1x256xf32>
    %233 = arith.addf %230, %232 : vector<1x256xf32>
    %234 = arith.negf %233 : vector<1x256xf32>
    %235 = math.exp %234 : vector<1x256xf32>
    %cst_29 = arith.constant 1.000000e+00 : f32
    %236 = vector.broadcast %cst_29 : f32 to vector<1x256xf32>
    %237 = arith.addf %236, %235 : vector<1x256xf32>
    %238 = arith.divf %236, %237 : vector<1x256xf32>
    %239 = vector.extract_strided_slice %24 {offsets = [5, 0], sizes = [1, 256], strides = [1, 1]} : vector<8x256xf32> to vector<1x256xf32>
    %240 = vector.broadcast %7 : f32 to vector<1x256xf32>
    %241 = arith.mulf %240, %219 : vector<1x256xf32>
    %242 = arith.addf %239, %241 : vector<1x256xf32>
    %243 = math.tanh %242 : vector<1x256xf32>
    %244 = vector.extract_strided_slice %28 {offsets = [5, 0], sizes = [1, 256], strides = [1, 1]} : vector<8x256xf32> to vector<1x256xf32>
    %245 = vector.broadcast %8 : f32 to vector<1x256xf32>
    %246 = arith.mulf %245, %219 : vector<1x256xf32>
    %247 = arith.addf %244, %246 : vector<1x256xf32>
    %248 = arith.negf %247 : vector<1x256xf32>
    %249 = math.exp %248 : vector<1x256xf32>
    %cst_30 = arith.constant 1.000000e+00 : f32
    %250 = vector.broadcast %cst_30 : f32 to vector<1x256xf32>
    %251 = arith.addf %250, %249 : vector<1x256xf32>
    %252 = arith.divf %250, %251 : vector<1x256xf32>
    %253 = arith.mulf %238, %217 : vector<1x256xf32>
    %254 = arith.mulf %229, %243 : vector<1x256xf32>
    %255 = arith.addf %253, %254 : vector<1x256xf32>
    %256 = math.tanh %255 : vector<1x256xf32>
    %257 = arith.mulf %252, %256 : vector<1x256xf32>
    %c5_31 = arith.constant 5 : index
    %c0_32 = arith.constant 0 : index
    %258 = vector.load %arg6[%c5_31, %c0_32] : memref<8x256xf32, #tpu.memory_space<vmem>>, vector<1x256xf32>
    tpu.vector_store %arg6[%c5_31, %c0_32], %257 {strides = array<i32>} : memref<8x256xf32, #tpu.memory_space<vmem>>, vector<1x256xf32>,
    %259 = vector.extract_strided_slice %16 {offsets = [6, 0], sizes = [1, 256], strides = [1, 1]} : vector<8x256xf32> to vector<1x256xf32>
    %260 = vector.broadcast %5 : f32 to vector<1x256xf32>
    %261 = arith.mulf %260, %257 : vector<1x256xf32>
    %262 = arith.addf %259, %261 : vector<1x256xf32>
    %263 = arith.negf %262 : vector<1x256xf32>
    %264 = math.exp %263 : vector<1x256xf32>
    %cst_33 = arith.constant 1.000000e+00 : f32
    %265 = vector.broadcast %cst_33 : f32 to vector<1x256xf32>
    %266 = arith.addf %265, %264 : vector<1x256xf32>
    %267 = arith.divf %265, %266 : vector<1x256xf32>
    %268 = vector.extract_strided_slice %20 {offsets = [6, 0], sizes = [1, 256], strides = [1, 1]} : vector<8x256xf32> to vector<1x256xf32>
    %269 = vector.broadcast %6 : f32 to vector<1x256xf32>
    %270 = arith.mulf %269, %257 : vector<1x256xf32>
    %271 = arith.addf %268, %270 : vector<1x256xf32>
    %272 = arith.negf %271 : vector<1x256xf32>
    %273 = math.exp %272 : vector<1x256xf32>
    %cst_34 = arith.constant 1.000000e+00 : f32
    %274 = vector.broadcast %cst_34 : f32 to vector<1x256xf32>
    %275 = arith.addf %274, %273 : vector<1x256xf32>
    %276 = arith.divf %274, %275 : vector<1x256xf32>
    %277 = vector.extract_strided_slice %24 {offsets = [6, 0], sizes = [1, 256], strides = [1, 1]} : vector<8x256xf32> to vector<1x256xf32>
    %278 = vector.broadcast %7 : f32 to vector<1x256xf32>
    %279 = arith.mulf %278, %257 : vector<1x256xf32>
    %280 = arith.addf %277, %279 : vector<1x256xf32>
    %281 = math.tanh %280 : vector<1x256xf32>
    %282 = vector.extract_strided_slice %28 {offsets = [6, 0], sizes = [1, 256], strides = [1, 1]} : vector<8x256xf32> to vector<1x256xf32>
    %283 = vector.broadcast %8 : f32 to vector<1x256xf32>
    %284 = arith.mulf %283, %257 : vector<1x256xf32>
    %285 = arith.addf %282, %284 : vector<1x256xf32>
    %286 = arith.negf %285 : vector<1x256xf32>
    %287 = math.exp %286 : vector<1x256xf32>
    %cst_35 = arith.constant 1.000000e+00 : f32
    %288 = vector.broadcast %cst_35 : f32 to vector<1x256xf32>
    %289 = arith.addf %288, %287 : vector<1x256xf32>
    %290 = arith.divf %288, %289 : vector<1x256xf32>
    %291 = arith.mulf %276, %255 : vector<1x256xf32>
    %292 = arith.mulf %267, %281 : vector<1x256xf32>
    %293 = arith.addf %291, %292 : vector<1x256xf32>
    %294 = math.tanh %293 : vector<1x256xf32>
    %295 = arith.mulf %290, %294 : vector<1x256xf32>
    %c6_36 = arith.constant 6 : index
    %c0_37 = arith.constant 0 : index
    %296 = vector.load %arg6[%c6_36, %c0_37] : memref<8x256xf32, #tpu.memory_space<vmem>>, vector<1x256xf32>
    tpu.vector_store %arg6[%c6_36, %c0_37], %295 {strides = array<i32>} : memref<8x256xf32, #tpu.memory_space<vmem>>, vector<1x256xf32>,
    %297 = vector.extract_strided_slice %16 {offsets = [7, 0], sizes = [1, 256], strides = [1, 1]} : vector<8x256xf32> to vector<1x256xf32>
    %298 = vector.broadcast %5 : f32 to vector<1x256xf32>
    %299 = arith.mulf %298, %295 : vector<1x256xf32>
    %300 = arith.addf %297, %299 : vector<1x256xf32>
    %301 = arith.negf %300 : vector<1x256xf32>
    %302 = math.exp %301 : vector<1x256xf32>
    %cst_38 = arith.constant 1.000000e+00 : f32
    %303 = vector.broadcast %cst_38 : f32 to vector<1x256xf32>
    %304 = arith.addf %303, %302 : vector<1x256xf32>
    %305 = arith.divf %303, %304 : vector<1x256xf32>
    %306 = vector.extract_strided_slice %20 {offsets = [7, 0], sizes = [1, 256], strides = [1, 1]} : vector<8x256xf32> to vector<1x256xf32>
    %307 = vector.broadcast %6 : f32 to vector<1x256xf32>
    %308 = arith.mulf %307, %295 : vector<1x256xf32>
    %309 = arith.addf %306, %308 : vector<1x256xf32>
    %310 = arith.negf %309 : vector<1x256xf32>
    %311 = math.exp %310 : vector<1x256xf32>
    %cst_39 = arith.constant 1.000000e+00 : f32
    %312 = vector.broadcast %cst_39 : f32 to vector<1x256xf32>
    %313 = arith.addf %312, %311 : vector<1x256xf32>
    %314 = arith.divf %312, %313 : vector<1x256xf32>
    %315 = vector.extract_strided_slice %24 {offsets = [7, 0], sizes = [1, 256], strides = [1, 1]} : vector<8x256xf32> to vector<1x256xf32>
    %316 = vector.broadcast %7 : f32 to vector<1x256xf32>
    %317 = arith.mulf %316, %295 : vector<1x256xf32>
    %318 = arith.addf %315, %317 : vector<1x256xf32>
    %319 = math.tanh %318 : vector<1x256xf32>
    %320 = vector.extract_strided_slice %28 {offsets = [7, 0], sizes = [1, 256], strides = [1, 1]} : vector<8x256xf32> to vector<1x256xf32>
    %321 = vector.broadcast %8 : f32 to vector<1x256xf32>
    %322 = arith.mulf %321, %295 : vector<1x256xf32>
    %323 = arith.addf %320, %322 : vector<1x256xf32>
    %324 = arith.negf %323 : vector<1x256xf32>
    %325 = math.exp %324 : vector<1x256xf32>
    %cst_40 = arith.constant 1.000000e+00 : f32
    %326 = vector.broadcast %cst_40 : f32 to vector<1x256xf32>
    %327 = arith.addf %326, %325 : vector<1x256xf32>
    %328 = arith.divf %326, %327 : vector<1x256xf32>
    %329 = arith.mulf %314, %293 : vector<1x256xf32>
    %330 = arith.mulf %305, %319 : vector<1x256xf32>
    %331 = arith.addf %329, %330 : vector<1x256xf32>
    %332 = math.tanh %331 : vector<1x256xf32>
    %333 = arith.mulf %328, %332 : vector<1x256xf32>
    %c7_41 = arith.constant 7 : index
    %c0_42 = arith.constant 0 : index
    %334 = vector.load %arg6[%c7_41, %c0_42] : memref<8x256xf32, #tpu.memory_space<vmem>>, vector<1x256xf32>
    tpu.vector_store %arg6[%c7_41, %c0_42], %333 {strides = array<i32>} : memref<8x256xf32, #tpu.memory_space<vmem>>, vector<1x256xf32>,
    %c0_43 = arith.constant 0 : index
    %c0_44 = arith.constant 0 : index
    %335 = vector.load %arg6[%c0_43, %c0_44] : memref<8x256xf32, #tpu.memory_space<vmem>>, vector<8x256xf32>
    %c0_45 = arith.constant 0 : index
    %c0_46 = arith.constant 0 : index
    %336 = vector.load %arg3[%c0_45, %c0_46] : memref<4x8xf32, #tpu.memory_space<vmem>>, vector<4x8xf32>
    %cst_47 = arith.constant dense<0.000000e+00> : vector<4x256xf32>
    %337 = tpu.matmul %336, %335, %cst_47 {dimension_numbers = #tpu.dot_dimension_numbers<[1], [0], [0], [1], [0, 0, 1, 1], [], []>} : vector<4x8xf32>, vector<8x256xf32>, vector<4x256xf32> -> vector<4x256xf32>
    %c0_48 = arith.constant 0 : index
    %c0_49 = arith.constant 0 : index
    %338 = vector.load %arg4[%c0_48, %c0_49] : memref<4x1xf32, #tpu.memory_space<vmem>>, vector<4x1xf32>
    %339 = vector.broadcast %338 : vector<4x1xf32> to vector<4x256xf32>
    %340 = arith.addf %337, %339 : vector<4x256xf32>
    %c0_50 = arith.constant 0 : index
    %c0_51 = arith.constant 0 : index
    %341 = vector.load %arg5[%c0_50, %c0_51] : memref<4x256xf32, #tpu.memory_space<vmem>>, vector<4x256xf32>
    tpu.vector_store %arg5[%c0_50, %c0_51], %340 {strides = array<i32>} : memref<4x256xf32, #tpu.memory_space<vmem>>, vector<4x256xf32>,
    return
  }
  func.func @transform_0(%arg0: i32) -> i32 {
    %c0_i32 = arith.constant 0 : i32
    %c0_i32_0 = arith.constant 0 : i32
    return %c0_i32 : i32
  }
  func.func @transform_1(%arg0: i32) -> (i32, i32) {
    %c0_i32 = arith.constant 0 : i32
    %c0_i32_0 = arith.constant 0 : i32
    return %c0_i32, %arg0 : i32, i32
  }
  func.func @transform_2(%arg0: i32) -> (i32, i32) {
    %c0_i32 = arith.constant 0 : i32
    %c0_i32_0 = arith.constant 0 : i32
    %c0_i32_1 = arith.constant 0 : i32
    return %c0_i32, %c0_i32_0 : i32, i32
  }
  func.func @transform_3(%arg0: i32) -> (i32, i32) {
    %c0_i32 = arith.constant 0 : i32
    %c0_i32_0 = arith.constant 0 : i32
    %c0_i32_1 = arith.constant 0 : i32
    return %c0_i32, %c0_i32_0 : i32, i32
  }
  func.func @transform_4(%arg0: i32) -> (i32, i32) {
    %c0_i32 = arith.constant 0 : i32
    %c0_i32_0 = arith.constant 0 : i32
    return %c0_i32, %arg0 : i32, i32
  }
}

</mosaic_0001>

<bundles_post_ra>
// kernel: tpu_custom_call.1
= control target key start
LH: loop header
LB: loop body
LE: loop exit
PB: predicated region body
PF: predicated region fallthrough
CT: control target
= control target key end

     0   :  { %9 = vsyncpa [#allocation6], 0  ;;  %s2351_s0 = inlined_call_operand.vmem [shape: f32[12], index: 0, kind: input, shape index: {}]   ;;  %s2352_s1 = inlined_call_operand.hbm [shape: f32[8,512], index: 1, kind: input, shape index: {}]   ;;  %s2353_s2 = inlined_call_operand.vmem [shape: f32[4,8], index: 2, kind: input, shape index: {}]   ;;  %s2354_s3 = inlined_call_operand.vmem [shape: f32[4,1], index: 3, kind: input, shape index: {}]   ;;  %s2355_s4 = inlined_call_operand.hbm [shape: f32[4,512], index: 4, kind: output, shape index: {}]  }
   0x1   :  { %10 = vsyncpa [#allocation4], 0 }
   0x2   :  { %12 = vsyncpa [#allocation4 + $0x1], 0 }
   0x3   :  { %13 = vsyncpa [#allocation5], 0 }
   0x4   :  { %15 = vsyncpa [#allocation5 + $0x1], 0  ;;  %s1898_s15 = smov 0   ;;  %s1900_s16 = smov 0  }
   0x5   :  { %s1902_s17 = smov 0   ;;  %s1904_s18 = smov 0  }
   0x6 LB: > { %s1919_s19 = sadd.s32 4294967295, %s1865_s18   ;;  %s1355_s20 = sadd.s32 4294967294, %s1865_s18   ;;  %s1865_s18 = sphi %s1904_s18, %s2378_s18   ;;  %s1861_s17 = sphi %s1902_s17, %s2377_s17   ;;  %s1857_s16 = sphi %s1900_s16, %s2376_s16   ;;  %s1853_s15 = sphi %s1898_s15, %s2375_s15  }
   0x7   : > { %p62_p0 = scmp.ne.s32.totalorder %s1857_s16, %s1853_s15  ;;  %p2356_p1 = scmp.eq.s32.totalorder %s1919_s19, 0 }
   0x8   : > { %p134_p3 = scmp.eq.s32.totalorder %s1355_s20, 1  ;;  %p1356_p5 = scmp.ge.s32.totalorder %s1865_s18, 1 }
   0x9   : > { %p1928_p4 = por %p2356_p1, %p62_p0  ;;  %p141_p7 = scmp.lt.s32.totalorder %s1865_s18, 3 }
   0xa   : > { %p1933_p6 = por %p134_p3, %p62_p0  ;;  %s154_s25 = sshll.u32 %s2351_s0, 4  ;;  %s155_s25 = int_to_ptr.vmem [resolvable:$true] %s154_s25 }
   0xb   : > { %s2359_s21 = scalar_select %p1928_p4, 1, 0 }
   0xc   : > { %s2360_s22 = scalar_select %p1933_p6, 1, 0 }
   0xd   : > { %p1941_p8 = pnand %p1356_p5, %p141_p7  ;;  %s1949_s27 = sadd.s32 1, %s1865_s18  }
   0xe   : > { %s46_s29 = ssub.s32 %s1865_s18, %s1949_s27  ;;  %s49_s5 = sadd.s32 1, %s1861_s17 }
   0xf   : > { %p1441_p10 = pneg %p1941_p8  ;;  %p1959_p12 = scmp.eq.s32.totalorder %s46_s29, 0 }
  0x10   : > { %p56_p13 = scmp.ne.s32.totalorder %s1861_s17, %s1857_s16  ;;  %s1750_s6 = scalar_lea.vmem %s155_s25, 16 }
  0x11   : > { %p1953_p11 = pnand %p1441_p10, %p2356_p1  ;;  %p1751_p0 = scmp.ne.s32.totalorder %s155_s25, %s1750_s6 }
  0x12   : > { %p1758_p9 = scmp.lt.s32.totalorder %s155_s25, %s155_s25  ;;  %p1759_p2 = scmp.lt.s32.totalorder %s1750_s6, %s1750_s6 }
  0x13   : > { %p1752_p3 = pneg %p1953_p11 }
  0x14   : > { %p1760_p10 = por %p1759_p2, %p1758_p9 }
  0x15   : > { %p1753_p5 = pnand %p1752_p3, %p1751_p0 }
  0x17   : > { %p1754_p7 = pneg %p1753_p5 }
  0x19   : > { %p1761_p1 = pnand %p1760_p10, %p1754_p7 }
  0x1b   : > { %1764 = shalt.err (!%p1761_p1)
}
  0x1c   : > { %s1867_s7 = smov [#allocation3]   ;;  %p57_p2 = scmp.eq.s32.totalorder %s1865_s18, 0 }
  0x1d   : > { %1444 = dma.vmem_to_smem (!%p1953_p11), %s155_s25, 16, %s1867_s7, [#allocation6]  }
  0x1e   : > { %s1973_s8 = scalar_select %p1959_p12, %s1861_s17, %s49_s5  }
  0x1f   : > { %p2364_p1 = scmp.eq.s32.totalorder %s1919_s19, 1  ;;  %p1454_p0 = scmp.lt.s32.totalorder %s1865_s18, 2 }
  0x20   : > { %s171_s10 = sand.u32 1, %s1861_s17   ;;  %p58_p3 = por %p57_p2, %p56_p13 }
  0x21   : > { %p1981_p9 = por %p2364_p1, %p56_p13  ;;  %s1359_s11 = sshll.u32 %s171_s10, 4 }
  0x22   : > { %s1431_s12 = sshll.u32 %s1865_s18, 8  ;;  %s175_s23 = scalar_lea.vmem [#allocation7], %s1359_s11 }
  0x23   : > { %s2365_s9 = scalar_select %p1981_p9, 1, 0 }
  0x24   : > { %s1994_s20 = scalar_lea.hbm %s2352_s1, %s1431_s12  ;;  %s183_s24 = sshll.u32 %s175_s23, 4  ;;  %s2000_s24 = int_to_ptr.vmem [resolvable:$true] %s183_s24 }
  0x25   : > { %p1996_p11 = pnand %p1454_p0, %p58_p3  ;;  %s172_s28 = scalar_lea.sflag [#allocation4], %s171_s10 }
  0x26   : > { %s1765_s29 = scalar_lea.hbm %s1994_s20, 256  ;;  %s1770_s6 = scalar_lea.hbm %s2352_s1, 512 }
  0x27   : > { %p1766_p12 = scmp.ne.s32.totalorder %s1994_s20, %s1765_s29  ;;  %p1767_p13 = pneg %p1996_p11 }
  0x28   : > { %p1771_p10 = scmp.lt.u32.totalorder %s1994_s20, %s2352_s1  ;;  %p1772_p2 = scmp.lt.u32.totalorder %s1770_s6, %s1765_s29 }
  0x29   : > { %p1768_p5 = pnand %p1767_p13, %p1766_p12  ;;  %p1774_p0 = scmp.lt.u32.totalorder %s1765_s29, %s1994_s20 }
  0x2a   : > { %p1773_p1 = por %p1772_p2, %p1771_p10 }
  0x2b   : > { %p1769_p7 = pneg %p1768_p5 }
  0x2c   : > { %p1775_p3 = por %p1774_p0, %p1773_p1 }
  0x2e   : > { %p1776_p6 = pnand %p1775_p3, %p1769_p7 }
  0x30   : > { %1779 = shalt.err (!%p1776_p6)
}
  0x31   : > { %s1780_s10 = scalar_lea.vmem %s2000_s24, 256  ;;  %s1868_s12 = smov [#allocation7]  }
  0x32   : > { %p1781_p12 = scmp.ne.s32.totalorder %s2000_s24, %s1780_s10  ;;  %s1785_s13 = sshll.u32 %s1868_s12, 4  ;;  %s1786_s13 = int_to_ptr.vmem [resolvable:$false] %s1785_s13 }
  0x33   : > { %s1787_s14 = scalar_lea.vmem %s1786_s13, 512  ;;  %p1788_p4 = scmp.lt.s32.totalorder %s2000_s24, %s1786_s13 }
  0x34   : > { %p1783_p5 = pnand %p1781_p12, %p1767_p13  ;;  %p1789_p10 = scmp.lt.s32.totalorder %s1787_s14, %s1780_s10 }
  0x36   : > { %p1784_p9 = pneg %p1783_p5  ;;  %p1790_p2 = por %p1789_p10, %p1788_p4 }
  0x38   : > { %p1791_p1 = pnand %p1790_p2, %p1784_p9 }
  0x3a   : > { %1794 = shalt.err (!%p1791_p1)
}
  0x3b   : > { %1448 = dma.hbm_to_vmem [thread:$0]  (!%p1996_p11), %s1994_s20, 256, %s2000_s24, %s172_s28  }
  0x3c   : > { %192 = sbr.rel (%p1941_p8) target bundleno = 742 (0x2e6), region = 36  ;;  %p2367_p6 = scmp.eq.s32.totalorder (!%p1941_p8), %s1919_s19, 0 }
  0x43   : > { %1840 = dma.done.wait (%p2367_p6), [#allocation6], 16   ;;  %p2368_p13 = pmov %p2367_p6 }
  0x44   : > { %s2034_s23 = sand.u32 1, %s1857_s16   ;;  %p2369_p4 = scmp.ne.s32.totalorder %s2359_s21, 0 }
  0x45   : > { %1842 = vsyncadd (%p2368_p13), [#allocation6], 4294967280  ;;  %s1364_s29 = sshll.u32 %s2034_s23, 4  ;;  %s199_s25 = scalar_lea.sflag [#allocation4], %s2034_s23 }
  0x46   : > { %s202_s30 = scalar_lea.vmem [#allocation7], %s1364_s29 }
  0x47   : > { %1844 = dma.done.wait (%p2369_p4), %s199_s25, 256  }
  0x48   : > { %1846 = vsyncadd (%p2369_p4), %s199_s25, 4294967040 }
  0x49   : > { %207 = sfence }
  0x4a   : > { %s232_s26 = sld [smem:[#allocation3]]  ;;  %s1366_s20 = sld [smem:[#allocation3 + $0x1]]  ;;  %v230_v0 = vld [vmem:[%s202_s30] sm:$0xff]  ;;  %v231_v1 = vld [vmem:[%s202_s30 + $0x8] sm:$0xff]  ;;  %vm1178_vm1 = vcmask 64512  }
  0x4b   : > { %s2042_s24 = sld [smem:[#allocation3 + $0x3]]  ;;  %s1369_s28 = sld [smem:[#allocation3 + $0x4]] }
  0x4c   : > { %s1370_s5 = sld [smem:[#allocation3 + $0x5]]  ;;  %s2044_s6 = sld [smem:[#allocation3 + $0x2]] }
  0x4d   : > { %s1373_s7 = sld [smem:[#allocation3 + $0x8]]  ;;  %s1374_s11 = sld [smem:[#allocation3 + $0x9]] }
  0x4e   : > { %s1372_s10 = sld [smem:[#allocation3 + $0x7]]  ;;  %s2046_s12 = sld [smem:[#allocation3 + $0xb]] }
  0x4f   : > { %s2048_s21 = sld [smem:[#allocation3 + $0xa]]  ;;  %s1371_s13 = sld [smem:[#allocation3 + $0x6]] }
  0x50   : > { %v244_v2 = vstv %s232_s26  ;;  %v250_v3 = vstv %s1366_s20  ;;  %s1365_s26 = sshll.u32 %s2034_s23, 3  ;;  %s1432_s20 = sshll.u32 %s1919_s19, 7 }
  0x51   : > { %v245_v4 = vmul.f32 %v244_v2, %v230_v0  ;;  %v246_v5 = vmul.f32 %v244_v2, %v231_v1  ;;  %v251_v6 = vmul.f32 %v250_v3, %v230_v0  ;;  %v252_v7 = vmul.f32 %v250_v3, %v231_v1  ;;  %p2372_p9 = scmp.ne.s32.totalorder %s2365_s9, 0  ;;  %s1872_s19 = smov [#allocation8]  }
  0x52   : > { %v2050_v8 = vstv %s1369_s28  ;;  %v2052_v9 = vstv %s1370_s5  ;;  %v262_v10 = vstv %s2042_s24  ;;  %v256_v19 = vstv %s2044_s6  ;;  %s227_s24 = scalar_lea.vmem [#allocation8], %s1365_s26 }
  0x53   : > { %v247_v11 = vstv %s1373_s7  ;;  %v253_v12 = vstv %s1374_s11  ;;  %v269_v13 = vmul.f32 0.0, %v2050_v8  ;;  %v285_v14 = vmul.f32 0.0, %v2052_v9  ;;  %s1273_s28 = sshll.u32 %s227_s24, 4  ;;  %s2307_s7 = scalar_lea.hbm %s2355_s4, %s1432_s20  ;;  %s2309_s28 = int_to_ptr.vmem [resolvable:$true] %s1273_s28 }
  0x54   : > { %v2057_v15 = vadd.f32 %v247_v11, %v245_v4  ;;  %v2059_v16 = vadd.f32 %v247_v11, %v246_v5  ;;  %v2061_v17 = vadd.f32 %v253_v12, %v251_v6  ;;  %v2063_v18 = vadd.f32 %v253_v12, %v252_v7  ;;  %s1259_s11 = scalar_lea.sflag [#allocation5], %s2034_s23 }
  0x55   : > { %v263_v20 = vmul.f32 %v262_v10, %v230_v0  ;;  %v264_v21 = vmul.f32 %v262_v10, %v231_v1  ;;  %v265_v22 = vstv %s2046_s12  ;;  %v2067_v23 = vstv %s1372_s10  ;;  %s1795_s10 = scalar_lea.vmem %s2309_s28, 128  ;;  %s1799_s12 = sshll.u32 %s1872_s19, 4  ;;  %s1800_s12 = int_to_ptr.vmem [resolvable:$false] %s1799_s12 }
  0x56   : > { %v270_v24 = vadd.f32 %v269_v13, %v2057_v15  ;;  %v271_v25 = vadd.f32 %v269_v13, %v2059_v16  ;;  %v286_v26 = vadd.f32 %v285_v14, %v2061_v17  ;;  %v287_v27 = vadd.f32 %v285_v14, %v2063_v18  ;;  %p1796_p8 = scmp.ne.s32.totalorder %s2309_s28, %s1795_s10  ;;  %p1802_p0 = scmp.lt.s32.totalorder %s2309_s28, %s1800_s12 }
  0x57   : > { %v257_v28 = vmul.f32 %v256_v19, %v230_v0  ;;  %v258_v29 = vmul.f32 %v256_v19, %v231_v1  ;;  %v259_v30 = vstv %s2048_s21  ;;  %v2074_v34 = vstv %s1371_s13  ;;  %s1801_s21 = scalar_lea.vmem %s1800_s12, 256 }
  0x58   : > { %v1377_v31 = vmul.f32 -1.442695, %v270_v24  ;;  %v1378_v32 = vmul.f32 -1.442695, %v271_v25  ;;  %v1379_v33 = vmul.f32 -1.442695, %v286_v26  ;;  %v2076_v35 = vadd.f32 %v265_v22, %v263_v20  ;;  %p1797_p11 = pnand %p1796_p8, %p2372_p9  ;;  %p1803_p3 = scmp.lt.s32.totalorder %s1801_s21, %s1795_s10 }
  0x59   : > { %v1380_v36 = vmul.f32 -1.442695, %v287_v27  ;;  %v307_v37 = vmul.f32 0.0, %v2067_v23  ;;  %v2079_v38 = vadd.f32 %v265_v22, %v264_v21  ;;  %v2081_v39 = vadd.f32 %v259_v30, %v257_v28 }
  0x5a   : > { %1494 = vpow2.f32 %v1377_v31  ;;  %v301_v40 = vmul.f32 0.0, %v2074_v34  ;;  %v2084_v41 = vadd.f32 %v259_v30, %v258_v29  ;;  %v1869_v10 = vmov 1966171168   ;;  %p1798_p7 = pneg %p1797_p11  ;;  %p1804_p12 = por %p1803_p3, %p1802_p0 }
  0x5b   : > { %1496 = vpow2.f32 %v1378_v32  ;;  %v308_v42 = vadd.f32 %v307_v37, %v2076_v35  ;;  %v309_v43 = vadd.f32 %v307_v37, %v2079_v38  ;;  %v336_v11 = vunpack.c.l.s4 %v1869_v10 }
  0x5c   : > { %1498 = vpow2.f32 %v1379_v33  ;;  %v302_v44 = vadd.f32 %v301_v40, %v2081_v39  ;;  %v303_v45 = vadd.f32 %v301_v40, %v2084_v41  ;;  %v338_v12 = vlaneseq  ;;  %p1805_p5 = pnand %p1804_p12, %p1798_p7 }
  0x5d   : > { %1500 = vpow2.f32 %v1380_v36  ;;  %v1381_v46 = vmul.f32 -1.442695, %v308_v42  ;;  %v1382_v47 = vmul.f32 -1.442695, %v309_v43  ;;  %v337_v20 = vunpack.c.0.s8 %v336_v11 }
  0x5e   : > { %1502 = vtanh.f32 %v302_v44  ;;  %v339_v21 = vshrl.u32 %v338_v12, 7  ;;  %vm2104_vm0 = vcmp.lt.s32.totalorder %v338_v12, 256 }
  0x5f   : > { %1504 = vtanh.f32 %v303_v45 }
  0x60   : > { %1506 = vpow2.f32 %v1381_v46  ;;  %v2098_v29 = vsub.s32 %v337_v20, %v339_v21 }
  0x61   : > { %1508 = vpow2.f32 %v1382_v47 }
  0x64   : > { %v1495_v48 = vpop.eup %1494 }
  0x65   : > { %v1497_v49 = vpop.eup %1496  ;;  %v278_v50 = vadd.f32 1.0, %v1495_v48 }
  0x66   : > { %v1499_v51 = vpop.eup %1498  ;;  %v279_v52 = vadd.f32 1.0, %v1497_v49 }
  0x67   : > { %v1501_v53 = vpop.eup %1500  ;;  %1510 = vrcp.f32 %v278_v50  ;;  %v294_v54 = vadd.f32 1.0, %v1499_v51 }
  0x68   : > { %1512 = vrcp.f32 %v279_v52  ;;  %v295_v55 = vadd.f32 1.0, %v1501_v53  ;;  %v1503_v56 = vpop.eup %1502 }
  0x69   : > { %1514 = vrcp.f32 %v294_v54  ;;  %v1505_v57 = vpop.eup %1504 }
  0x6a   : > { %1516 = vrcp.f32 %v295_v55  ;;  %v1507_v58 = vpop.eup %1506 }
  0x6b   : > { %v1509_v59 = vpop.eup %1508  ;;  %v316_v62 = vadd.f32 1.0, %v1507_v58 }
  0x6c   : > { %v317_v1 = vadd.f32 1.0, %v1509_v59 }
  0x6d   : > { %1518 = vrcp.f32 %v316_v62 }
  0x6e   : > { %1520 = vrcp.f32 %v317_v1 }
  0x71   : > { %v1511_v60 = vpop.eup %1510 }
  0x72   : > { %v1513_v61 = vpop.eup %1512  ;;  %v324_v63 = vmul.f32 %v1511_v60, %v1503_v56 }
  0x73   : > { %v1515_v0 = vpop.eup %1514  ;;  %v325_v2 = vmul.f32 %v1513_v61, %v1505_v57 }
  0x74   : > { %v1517_v3 = vpop.eup %1516  ;;  %v322_v4 = vmul.f32 0.0, %v1515_v0 }
  0x75   : > { %v323_v5 = vmul.f32 0.0, %v1517_v3 }
  0x76   : > { %v2090_v6 = vadd.f32 %v324_v63, %v322_v4 }
  0x77   : > { %v2092_v7 = vadd.f32 %v325_v2, %v323_v5  ;;  %v1519_v13 = vpop.eup %1518 }
  0x78   : > { %1522 = vtanh.f32 %v2090_v6  ;;  %v1521_v14 = vpop.eup %1520 }
  0x79   : > { %1524 = vtanh.f32 %v2092_v7 }
  0x82   : > { %v1523_v19 = vpop.eup %1522 }
  0x83   : > { %v1525_v22 = vpop.eup %1524  ;;  %v330_v24 = vmul.f32 %v1523_v19, %v1519_v13 }
  0x84   : > { %v331_v25 = vmul.f32 %v1525_v22, %v1521_v14  ;;  %v436_v22 = vrot.slane %v2090_v6, 7 }
  0x85   : > { %v356_v26 = vmul.f32 %v330_v24, %v2050_v8  ;;  %v378_v27 = vmul.f32 %v330_v24, %v2052_v9  ;;  %v412_v42 = vmul.f32 %v330_v24, %v2067_v23  ;;  %v400_v50 = vmul.f32 %v330_v24, %v2074_v34 }
  0x86   : > { %v334_v28 = vcombine.low %v330_v24, %v331_v25  ;;  %v357_v30 = vmul.f32 %v331_v25, %v2050_v8  ;;  %v379_v31 = vmul.f32 %v331_v25, %v2052_v9  ;;  %v413_v46 = vmul.f32 %v331_v25, %v2067_v23 }
  0x87   : > { %v360_v32 = vrot.slane %v356_v26, 7  ;;  %v382_v33 = vrot.slane %v378_v27, 7  ;;  %v401_v53 = vmul.f32 %v331_v25, %v2074_v34  ;;  %v416_v56 = vrot.slane %v412_v42, 7 }
  0x88   : > { %v341_v36 = vrot.slane %v334_v28, %v2098_v29  ;;  %v361_v37 = vrot.slane %v357_v30, 7  ;;  %v383_v40 = vrot.slane %v379_v31, 7  ;;  %v417_v57 = vrot.slane %v413_v46, 7 }
  0x89   : > { %v364_v44 = vadd.f32 %v360_v32, %v2057_v15  ;;  %v386_v45 = vadd.f32 %v382_v33, %v2061_v17  ;;  %v404_v58 = vrot.slane %v400_v50, 7  ;;  %v405_v59 = vrot.slane %v401_v53, 7 }
  0x8a   : > { %v348_v47 = vrot.slane %v341_v36, %v2098_v29  ;;  %v365_v48 = vadd.f32 %v361_v37, %v2059_v16  ;;  %v387_v49 = vadd.f32 %v383_v40, %v2063_v18  ;;  %v420_v60 = vadd.f32 %v416_v56, %v2076_v35 }
  0x8b   : > { %v1383_v51 = vmul.f32 -1.442695, %v364_v44  ;;  %v1385_v52 = vmul.f32 -1.442695, %v386_v45  ;;  %v421_v61 = vadd.f32 %v417_v57, %v2079_v38  ;;  %v408_v62 = vadd.f32 %v404_v58, %v2081_v39 }
  0x8c   : > { %354 = vst.msk [vmem:[#allocation2] ss:$8 sm:$0x3] %vm2104_vm0, %v348_v47  ;;  %v1384_v54 = vmul.f32 -1.442695, %v365_v48  ;;  %v409_v63 = vadd.f32 %v405_v59, %v2084_v41  ;;  %v437_v25 = vrot.slane %v2092_v7, 7 }
  0x8d   : > { %v1386_v55 = vmul.f32 -1.442695, %v387_v49  ;;  %1526 = vpow2.f32 %v1383_v51  ;;  %v1387_v0 = vmul.f32 -1.442695, %v420_v60  ;;  %v1388_v1 = vmul.f32 -1.442695, %v421_v61 }
  0x8e   : > { %1528 = vpow2.f32 %v1384_v54 }
  0x8f   : > { %1530 = vpow2.f32 %v1385_v52 }
  0x90   : > { %1532 = vpow2.f32 %v1386_v55 }
  0x91   : > { %1534 = vtanh.f32 %v408_v62 }
  0x92   : > { %1536 = vtanh.f32 %v409_v63 }
  0x93   : > { %1538 = vpow2.f32 %v1387_v0 }
  0x94   : > { %1540 = vpow2.f32 %v1388_v1 }
  0x97   : > { %v1527_v2 = vpop.eup %1526 }
  0x98   : > { %v1529_v3 = vpop.eup %1528  ;;  %v372_v4 = vadd.f32 1.0, %v1527_v2 }
  0x99   : > { %v1531_v5 = vpop.eup %1530  ;;  %v373_v10 = vadd.f32 1.0, %v1529_v3 }
  0x9a   : > { %v1533_v11 = vpop.eup %1532  ;;  %1542 = vrcp.f32 %v372_v4  ;;  %v394_v12 = vadd.f32 1.0, %v1531_v5 }
  0x9b   : > { %1544 = vrcp.f32 %v373_v10  ;;  %v395_v13 = vadd.f32 1.0, %v1533_v11  ;;  %v1535_v14 = vpop.eup %1534 }
  0x9c   : > { %1546 = vrcp.f32 %v394_v12  ;;  %v1537_v19 = vpop.eup %1536 }
  0x9d   : > { %1548 = vrcp.f32 %v395_v13  ;;  %v1539_v20 = vpop.eup %1538 }
  0x9e   : > { %v1541_v21 = vpop.eup %1540  ;;  %v428_v27 = vadd.f32 1.0, %v1539_v20 }
  0x9f   : > { %v429_v31 = vadd.f32 1.0, %v1541_v21 }
  0xa0   : > { %1550 = vrcp.f32 %v428_v27 }
  0xa1   : > { %1552 = vrcp.f32 %v429_v31 }
  0xa4   : > { %v1543_v24 = vpop.eup %1542 }
  0xa5   : > { %v1545_v26 = vpop.eup %1544  ;;  %v442_v28 = vmul.f32 %v1543_v24, %v1535_v14 }
  0xa6   : > { %v1547_v30 = vpop.eup %1546  ;;  %v443_v32 = vmul.f32 %v1545_v26, %v1537_v19 }
  0xa7   : > { %v1549_v33 = vpop.eup %1548  ;;  %v440_v36 = vmul.f32 %v1547_v30, %v436_v22 }
  0xa8   : > { %v441_v37 = vmul.f32 %v1549_v33, %v437_v25 }
  0xa9   : > { %v2124_v40 = vadd.f32 %v442_v28, %v440_v36 }
  0xaa   : > { %v2126_v42 = vadd.f32 %v443_v32, %v441_v37  ;;  %v1551_v6 = vpop.eup %1550 }
  0xab   : > { %1554 = vtanh.f32 %v2124_v40  ;;  %v1553_v7 = vpop.eup %1552 }
  0xac   : > { %1556 = vtanh.f32 %v2126_v42 }
  0xb5   : > { %v1555_v44 = vpop.eup %1554 }
  0xb6   : > { %v1557_v45 = vpop.eup %1556  ;;  %v448_v46 = vmul.f32 %v1555_v44, %v1551_v6 }
  0xb7   : > { %v449_v47 = vmul.f32 %v1557_v45, %v1553_v7 }
  0xb8   : > { %v472_v48 = vmul.f32 %v448_v46, %v2050_v8  ;;  %v494_v49 = vmul.f32 %v448_v46, %v2052_v9  ;;  %v528_v58 = vmul.f32 %v448_v46, %v2067_v23  ;;  %v516_v1 = vmul.f32 %v448_v46, %v2074_v34 }
  0xb9   : > { %v452_v50 = vcombine.low %v448_v46, %v449_v47  ;;  %v473_v51 = vmul.f32 %v449_v47, %v2050_v8  ;;  %v495_v52 = vmul.f32 %v449_v47, %v2052_v9  ;;  %v529_v61 = vmul.f32 %v449_v47, %v2067_v23 }
  0xba   : > { %v476_v53 = vrot.slane %v472_v48, 7  ;;  %v498_v54 = vrot.slane %v494_v49, 7  ;;  %v517_v4 = vmul.f32 %v449_v47, %v2074_v34  ;;  %v532_v12 = vrot.slane %v528_v58, 7 }
  0xbb   : > { %v459_v55 = vrot.slane %v452_v50, %v2098_v29  ;;  %v477_v56 = vrot.slane %v473_v51, 7  ;;  %v499_v57 = vrot.slane %v495_v52, 7  ;;  %v533_v13 = vrot.slane %v529_v61, 7 }
  0xbc   : > { %v480_v59 = vadd.f32 %v476_v53, %v2057_v15  ;;  %v502_v60 = vadd.f32 %v498_v54, %v2061_v17  ;;  %v520_v14 = vrot.slane %v516_v1, 7  ;;  %v521_v19 = vrot.slane %v517_v4, 7 }
  0xbd   : > { %v460_v62 = vcombine.high %v459_v55, %v459_v55  ;;  %v481_v63 = vadd.f32 %v477_v56, %v2059_v16  ;;  %v503_v0 = vadd.f32 %v499_v57, %v2063_v18  ;;  %v536_v20 = vadd.f32 %v532_v12, %v2076_v35 }
  0xbe   : > { %v1389_v2 = vmul.f32 -1.442695, %v480_v59  ;;  %v1391_v3 = vmul.f32 -1.442695, %v502_v60  ;;  %v537_v21 = vadd.f32 %v533_v13, %v2079_v38  ;;  %v524_v22 = vadd.f32 %v520_v14, %v2081_v39 }
  0xbf   : > { %v467_v5 = vrot.slane %v460_v62, %v2098_v29  ;;  %v1390_v10 = vmul.f32 -1.442695, %v481_v63  ;;  %v1392_v11 = vmul.f32 -1.442695, %v503_v0  ;;  %v525_v24 = vadd.f32 %v521_v19, %v2084_v41 }
  0xc0   : > { %1558 = vpow2.f32 %v1389_v2  ;;  %v1393_v25 = vmul.f32 -1.442695, %v536_v20  ;;  %v1394_v26 = vmul.f32 -1.442695, %v537_v21  ;;  %v552_v46 = vrot.slane %v2124_v40, 7 }
  0xc1   : > { %470 = vst.msk [vmem:[#allocation2 + $0x1] ss:$8 sm:$0x3] %vm2104_vm0, %v467_v5  ;;  %1560 = vpow2.f32 %v1390_v10  ;;  %v553_v48 = vrot.slane %v2126_v42, 7 }
  0xc2   : > { %1562 = vpow2.f32 %v1391_v3 }
  0xc3   : > { %1564 = vpow2.f32 %v1392_v11 }
  0xc4   : > { %1566 = vtanh.f32 %v524_v22 }
  0xc5   : > { %1568 = vtanh.f32 %v525_v24 }
  0xc6   : > { %1570 = vpow2.f32 %v1393_v25 }
  0xc7   : > { %1572 = vpow2.f32 %v1394_v26 }
  0xca   : > { %v1559_v27 = vpop.eup %1558 }
  0xcb   : > { %v1561_v28 = vpop.eup %1560  ;;  %v488_v30 = vadd.f32 1.0, %v1559_v27 }
  0xcc   : > { %v1563_v31 = vpop.eup %1562  ;;  %v489_v32 = vadd.f32 1.0, %v1561_v28 }
  0xcd   : > { %v1565_v33 = vpop.eup %1564  ;;  %1574 = vrcp.f32 %v488_v30  ;;  %v510_v36 = vadd.f32 1.0, %v1563_v31 }
  0xce   : > { %1576 = vrcp.f32 %v489_v32  ;;  %v511_v37 = vadd.f32 1.0, %v1565_v33  ;;  %v1567_v6 = vpop.eup %1566 }
  0xcf   : > { %1578 = vrcp.f32 %v510_v36  ;;  %v1569_v7 = vpop.eup %1568 }
  0xd0   : > { %1580 = vrcp.f32 %v511_v37  ;;  %v1571_v44 = vpop.eup %1570 }
  0xd1   : > { %v1573_v45 = vpop.eup %1572  ;;  %v544_v50 = vadd.f32 1.0, %v1571_v44 }
  0xd2   : > { %v545_v53 = vadd.f32 1.0, %v1573_v45 }
  0xd3   : > { %1582 = vrcp.f32 %v544_v50 }
  0xd4   : > { %1584 = vrcp.f32 %v545_v53 }
  0xd7   : > { %v1575_v47 = vpop.eup %1574 }
  0xd8   : > { %v1577_v49 = vpop.eup %1576  ;;  %v558_v51 = vmul.f32 %v1575_v47, %v1567_v6 }
  0xd9   : > { %v1579_v52 = vpop.eup %1578  ;;  %v559_v54 = vmul.f32 %v1577_v49, %v1569_v7 }
  0xda   : > { %v1581_v55 = vpop.eup %1580  ;;  %v556_v56 = vmul.f32 %v1579_v52, %v552_v46 }
  0xdb   : > { %v557_v57 = vmul.f32 %v1581_v55, %v553_v48 }
  0xdc   : > { %v2152_v58 = vadd.f32 %v558_v51, %v556_v56 }
  0xdd   : > { %v2154_v59 = vadd.f32 %v559_v54, %v557_v57  ;;  %v1583_v40 = vpop.eup %1582 }
  0xde   : > { %1586 = vtanh.f32 %v2152_v58  ;;  %v1585_v42 = vpop.eup %1584 }
  0xdf   : > { %1588 = vtanh.f32 %v2154_v59 }
  0xe8   : > { %v1587_v60 = vpop.eup %1586 }
  0xe9   : > { %v1589_v61 = vpop.eup %1588  ;;  %v564_v62 = vmul.f32 %v1587_v60, %v1583_v40 }
  0xea   : > { %v565_v63 = vmul.f32 %v1589_v61, %v1585_v42 }
  0xeb   : > { %v588_v0 = vmul.f32 %v564_v62, %v2050_v8  ;;  %v610_v1 = vmul.f32 %v564_v62, %v2052_v9  ;;  %v644_v14 = vmul.f32 %v564_v62, %v2067_v23  ;;  %v632_v26 = vmul.f32 %v564_v62, %v2074_v34 }
  0xec   : > { %v568_v2 = vcombine.low %v564_v62, %v565_v63  ;;  %v589_v3 = vmul.f32 %v565_v63, %v2050_v8  ;;  %v611_v4 = vmul.f32 %v565_v63, %v2052_v9  ;;  %v645_v21 = vmul.f32 %v565_v63, %v2067_v23 }
  0xed   : > { %v592_v5 = vrot.slane %v588_v0, 7  ;;  %v614_v10 = vrot.slane %v610_v1, 7  ;;  %v633_v30 = vmul.f32 %v565_v63, %v2074_v34  ;;  %v648_v36 = vrot.slane %v644_v14, 7 }
  0xee   : > { %v575_v11 = vrot.slane %v568_v2, %v2098_v29  ;;  %v593_v12 = vrot.slane %v589_v3, 7  ;;  %v615_v13 = vrot.slane %v611_v4, 7  ;;  %v649_v37 = vrot.slane %v645_v21, 7 }
  0xef   : > { %v596_v19 = vadd.f32 %v592_v5, %v2057_v15  ;;  %v618_v20 = vadd.f32 %v614_v10, %v2061_v17  ;;  %v636_v6 = vrot.slane %v632_v26, 7  ;;  %v637_v7 = vrot.slane %v633_v30, 7 }
  0xf0   : > { %v582_v22 = vrot.slane %v575_v11, %v2098_v29  ;;  %v597_v24 = vadd.f32 %v593_v12, %v2059_v16  ;;  %v619_v25 = vadd.f32 %v615_v13, %v2063_v18  ;;  %v652_v44 = vadd.f32 %v648_v36, %v2076_v35 }
  0xf1   : > { %v1395_v27 = vmul.f32 -1.442695, %v596_v19  ;;  %v1397_v28 = vmul.f32 -1.442695, %v618_v20  ;;  %v653_v45 = vadd.f32 %v649_v37, %v2079_v38  ;;  %v640_v46 = vadd.f32 %v636_v6, %v2081_v39 }
  0xf2   : > { %v583_v31 = vcombine.high %v582_v22, %v582_v22  ;;  %v1396_v32 = vmul.f32 -1.442695, %v597_v24  ;;  %v1398_v33 = vmul.f32 -1.442695, %v619_v25  ;;  %v641_v47 = vadd.f32 %v637_v7, %v2084_v41 }
  0xf3   : > { %1590 = vpow2.f32 %v1395_v27  ;;  %v1399_v48 = vmul.f32 -1.442695, %v652_v44  ;;  %v1400_v49 = vmul.f32 -1.442695, %v653_v45  ;;  %v668_v62 = vrot.slane %v2152_v58, 7 }
  0xf4   : > { %586 = vst.msk [vmem:[#allocation2 + $0x2] ss:$8 sm:$0x3] %vm2104_vm0, %v583_v31  ;;  %1592 = vpow2.f32 %v1396_v32  ;;  %v669_v0 = vrot.slane %v2154_v59, 7 }
  0xf5   : > { %1594 = vpow2.f32 %v1397_v28 }
  0xf6   : > { %1596 = vpow2.f32 %v1398_v33 }
  0xf7   : > { %1598 = vtanh.f32 %v640_v46 }
  0xf8   : > { %1600 = vtanh.f32 %v641_v47 }
  0xf9   : > { %1602 = vpow2.f32 %v1399_v48 }
  0xfa   : > { %1604 = vpow2.f32 %v1400_v49 }
  0xfd   : > { %v1591_v50 = vpop.eup %1590 }
  0xfe   : > { %v1593_v51 = vpop.eup %1592  ;;  %v604_v52 = vadd.f32 1.0, %v1591_v50 }
  0xff   : > { %v1595_v53 = vpop.eup %1594  ;;  %v605_v54 = vadd.f32 1.0, %v1593_v51 }
 0x100   : > { %v1597_v55 = vpop.eup %1596  ;;  %1606 = vrcp.f32 %v604_v52  ;;  %v626_v56 = vadd.f32 1.0, %v1595_v53 }
 0x101   : > { %1608 = vrcp.f32 %v605_v54  ;;  %v627_v57 = vadd.f32 1.0, %v1597_v55  ;;  %v1599_v40 = vpop.eup %1598 }
 0x102   : > { %1610 = vrcp.f32 %v626_v56  ;;  %v1601_v42 = vpop.eup %1600 }
 0x103   : > { %1612 = vrcp.f32 %v627_v57  ;;  %v1603_v60 = vpop.eup %1602 }
 0x104   : > { %v1605_v61 = vpop.eup %1604  ;;  %v660_v2 = vadd.f32 1.0, %v1603_v60 }
 0x105   : > { %v661_v5 = vadd.f32 1.0, %v1605_v61 }
 0x106   : > { %1614 = vrcp.f32 %v660_v2 }
 0x107   : > { %1616 = vrcp.f32 %v661_v5 }
 0x10a   : > { %v1607_v63 = vpop.eup %1606 }
 0x10b   : > { %v1609_v1 = vpop.eup %1608  ;;  %v674_v3 = vmul.f32 %v1607_v63, %v1599_v40 }
 0x10c   : > { %v1611_v4 = vpop.eup %1610  ;;  %v675_v10 = vmul.f32 %v1609_v1, %v1601_v42 }
 0x10d   : > { %v1613_v11 = vpop.eup %1612  ;;  %v672_v12 = vmul.f32 %v1611_v4, %v668_v62 }
 0x10e   : > { %v673_v13 = vmul.f32 %v1613_v11, %v669_v0 }
 0x10f   : > { %v2180_v14 = vadd.f32 %v674_v3, %v672_v12 }
 0x110   : > { %v2182_v19 = vadd.f32 %v675_v10, %v673_v13  ;;  %v1615_v58 = vpop.eup %1614 }
 0x111   : > { %1618 = vtanh.f32 %v2180_v14  ;;  %v1617_v59 = vpop.eup %1616 }
 0x112   : > { %1620 = vtanh.f32 %v2182_v19 }
 0x11b   : > { %v1619_v20 = vpop.eup %1618 }
 0x11c   : > { %v1621_v21 = vpop.eup %1620  ;;  %v680_v22 = vmul.f32 %v1619_v20, %v1615_v58 }
 0x11d   : > { %v681_v24 = vmul.f32 %v1621_v21, %v1617_v59 }
 0x11e   : > { %v705_v25 = vmul.f32 %v680_v22, %v2050_v8  ;;  %v727_v26 = vmul.f32 %v680_v22, %v2052_v9  ;;  %v761_v6 = vmul.f32 %v680_v22, %v2067_v23  ;;  %v749_v49 = vmul.f32 %v680_v22, %v2074_v34 }
 0x11f   : > { %v684_v27 = vcombine.low %v680_v22, %v681_v24  ;;  %v706_v28 = vmul.f32 %v681_v24, %v2050_v8  ;;  %v728_v30 = vmul.f32 %v681_v24, %v2052_v9  ;;  %v762_v45 = vmul.f32 %v681_v24, %v2067_v23 }
 0x120   : > { %v709_v31 = vrot.slane %v705_v25, 7  ;;  %v731_v32 = vrot.slane %v727_v26, 7  ;;  %v750_v52 = vmul.f32 %v681_v24, %v2074_v34  ;;  %v765_v56 = vrot.slane %v761_v6, 7 }
 0x121   : > { %v691_v33 = vrot.slane %v684_v27, %v2098_v29  ;;  %v710_v36 = vrot.slane %v706_v28, 7  ;;  %v732_v37 = vrot.slane %v728_v30, 7  ;;  %v766_v57 = vrot.slane %v762_v45, 7 }
 0x122   : > { %v713_v7 = vadd.f32 %v709_v31, %v2057_v15  ;;  %v735_v44 = vadd.f32 %v731_v32, %v2061_v17  ;;  %v753_v42 = vrot.slane %v749_v49, 7  ;;  %v754_v60 = vrot.slane %v750_v52, 7 }
 0x123   : > { %v692_v46 = vcombine.high %v691_v33, %v691_v33  ;;  %v714_v47 = vadd.f32 %v710_v36, %v2059_v16  ;;  %v736_v48 = vadd.f32 %v732_v37, %v2063_v18  ;;  %v769_v61 = vadd.f32 %v765_v56, %v2076_v35 }
 0x124   : > { %v1401_v50 = vmul.f32 -1.442695, %v713_v7  ;;  %v1403_v51 = vmul.f32 -1.442695, %v735_v44  ;;  %v770_v62 = vadd.f32 %v766_v57, %v2079_v38  ;;  %v757_v63 = vadd.f32 %v753_v42, %v2081_v39 }
 0x125   : > { %v699_v53 = vrot.slane %v692_v46, %v2098_v29  ;;  %v1402_v54 = vmul.f32 -1.442695, %v714_v47  ;;  %v1404_v55 = vmul.f32 -1.442695, %v736_v48  ;;  %v758_v0 = vadd.f32 %v754_v60, %v2084_v41 }
 0x126   : > { %1622 = vpow2.f32 %v1401_v50  ;;  %v1405_v1 = vmul.f32 -1.442695, %v769_v61  ;;  %v1406_v2 = vmul.f32 -1.442695, %v770_v62  ;;  %v785_v24 = vrot.slane %v2180_v14, 7 }
 0x127   : > { %v700_v40 = vcombine.high %v699_v53, %v699_v53  ;;  %1624 = vpow2.f32 %v1402_v54  ;;  %v786_v26 = vrot.slane %v2182_v19, 7 }
 0x128   : > { %1626 = vpow2.f32 %v1403_v51 }
 0x129   : > { %703 = vst.msk [vmem:[#allocation2 + $0x3] ss:$8 sm:$0x3] %vm2104_vm0, %v700_v40  ;;  %1628 = vpow2.f32 %v1404_v55 }
 0x12a   : > { %1630 = vtanh.f32 %v757_v63 }
 0x12b   : > { %1632 = vtanh.f32 %v758_v0 }
 0x12c   : > { %1634 = vpow2.f32 %v1405_v1 }
 0x12d   : > { %1636 = vpow2.f32 %v1406_v2 }
 0x130   : > { %v1623_v3 = vpop.eup %1622 }
 0x131   : > { %v1625_v4 = vpop.eup %1624  ;;  %v721_v5 = vadd.f32 1.0, %v1623_v3 }
 0x132   : > { %v1627_v10 = vpop.eup %1626  ;;  %v722_v11 = vadd.f32 1.0, %v1625_v4 }
 0x133   : > { %v1629_v12 = vpop.eup %1628  ;;  %1638 = vrcp.f32 %v721_v5  ;;  %v743_v13 = vadd.f32 1.0, %v1627_v10 }
 0x134   : > { %1640 = vrcp.f32 %v722_v11  ;;  %v744_v58 = vadd.f32 1.0, %v1629_v12  ;;  %v1631_v59 = vpop.eup %1630 }
 0x135   : > { %1642 = vrcp.f32 %v743_v13  ;;  %v1633_v20 = vpop.eup %1632 }
 0x136   : > { %1644 = vrcp.f32 %v744_v58  ;;  %v1635_v21 = vpop.eup %1634 }
 0x137   : > { %v1637_v22 = vpop.eup %1636  ;;  %v777_v28 = vadd.f32 1.0, %v1635_v21 }
 0x138   : > { %v778_v32 = vadd.f32 1.0, %v1637_v22 }
 0x139   : > { %1646 = vrcp.f32 %v777_v28 }
 0x13a   : > { %1648 = vrcp.f32 %v778_v32 }
 0x13d   : > { %v1639_v25 = vpop.eup %1638 }
 0x13e   : > { %v1641_v27 = vpop.eup %1640  ;;  %v791_v30 = vmul.f32 %v1639_v25, %v1631_v59 }
 0x13f   : > { %v1643_v31 = vpop.eup %1642  ;;  %v792_v33 = vmul.f32 %v1641_v27, %v1633_v20 }
 0x140   : > { %v1645_v36 = vpop.eup %1644  ;;  %v789_v37 = vmul.f32 %v1643_v31, %v785_v24 }
 0x141   : > { %v790_v6 = vmul.f32 %v1645_v36, %v786_v26 }
 0x142   : > { %v2208_v7 = vadd.f32 %v791_v30, %v789_v37 }
 0x143   : > { %v2210_v44 = vadd.f32 %v792_v33, %v790_v6  ;;  %v1647_v14 = vpop.eup %1646 }
 0x144   : > { %1650 = vtanh.f32 %v2208_v7  ;;  %v1649_v19 = vpop.eup %1648 }
 0x145   : > { %1652 = vtanh.f32 %v2210_v44 }
 0x14e   : > { %v1651_v45 = vpop.eup %1650 }
 0x14f   : > { %v1653_v46 = vpop.eup %1652  ;;  %v797_v47 = vmul.f32 %v1651_v45, %v1647_v14 }
 0x150   : > { %v798_v48 = vmul.f32 %v1653_v46, %v1649_v19  ;;  %v900_v46 = vrot.slane %v2208_v7, 7  ;;  %v1870_v7 = vmov 0.0  }
 0x151   : > { %v820_v49 = vmul.f32 %v797_v47, %v2050_v8  ;;  %v842_v50 = vmul.f32 %v797_v47, %v2052_v9  ;;  %v876_v42 = vmul.f32 %v797_v47, %v2067_v23  ;;  %v864_v2 = vmul.f32 %v797_v47, %v2074_v34  ;;  %1246 = vmatprep.mubr.f32.mxu0 %v1870_v7 }
 0x152   : > { %v801_v51 = vcombine.high %v797_v47, %v798_v48  ;;  %v821_v52 = vmul.f32 %v798_v48, %v2050_v8  ;;  %v843_v53 = vmul.f32 %v798_v48, %v2052_v9  ;;  %v877_v62 = vmul.f32 %v798_v48, %v2067_v23 }
 0x153   : > { %v824_v54 = vrot.slane %v820_v49, 7  ;;  %v846_v55 = vrot.slane %v842_v50, 7  ;;  %v865_v5 = vmul.f32 %v798_v48, %v2074_v34  ;;  %v880_v12 = vrot.slane %v876_v42, 7 }
 0x154   : > { %v808_v56 = vrot.slane %v801_v51, %v2098_v29  ;;  %v825_v57 = vrot.slane %v821_v52, 7  ;;  %v847_v40 = vrot.slane %v843_v53, 7  ;;  %v881_v13 = vrot.slane %v877_v62, 7 }
 0x155   : > { %v828_v60 = vadd.f32 %v824_v54, %v2057_v15  ;;  %v850_v61 = vadd.f32 %v846_v55, %v2061_v17  ;;  %v868_v58 = vrot.slane %v864_v2, 7  ;;  %v869_v59 = vrot.slane %v865_v5, 7 }
 0x156   : > { %v815_v63 = vrot.slane %v808_v56, %v2098_v29  ;;  %v829_v0 = vadd.f32 %v825_v57, %v2059_v16  ;;  %v851_v1 = vadd.f32 %v847_v40, %v2063_v18  ;;  %v884_v20 = vadd.f32 %v880_v12, %v2076_v35 }
 0x157   : > { %v1407_v3 = vmul.f32 -1.442695, %v828_v60  ;;  %v1409_v4 = vmul.f32 -1.442695, %v850_v61  ;;  %v885_v21 = vadd.f32 %v881_v13, %v2079_v38  ;;  %v872_v22 = vadd.f32 %v868_v58, %v2081_v39  ;;  %v1172_v60 = vld [vmem:[%s2354_s3] sm:$0xf] }
 0x158   : > { %818 = vst.msk [vmem:[#allocation2 + $0x4] ss:$8 sm:$0x3] %vm2104_vm0, %v815_v63  ;;  %v1408_v10 = vmul.f32 -1.442695, %v829_v0  ;;  %v873_v24 = vadd.f32 %v869_v59, %v2084_v41  ;;  %v901_v48 = vrot.slane %v2210_v44, 7 }
 0x159   : > { %v1410_v11 = vmul.f32 -1.442695, %v851_v1  ;;  %1654 = vpow2.f32 %v1407_v3  ;;  %v1411_v25 = vmul.f32 -1.442695, %v884_v20  ;;  %v1412_v26 = vmul.f32 -1.442695, %v885_v21 }
 0x15a   : > { %1656 = vpow2.f32 %v1408_v10  ;;  %v1871_v62 = vmov 0  }
 0x15b   : > { %1658 = vpow2.f32 %v1409_v4  ;;  %1493 = vset.pattern.permute.xlu0 %v1871_v62 }
 0x15c   : > { %1660 = vpow2.f32 %v1410_v11  ;;  %1175 = vperm.xlu0 %1493, %v1172_v60  }
 0x15d   : > { %1662 = vtanh.f32 %v872_v22 }
 0x15e   : > { %1664 = vtanh.f32 %v873_v24 }
 0x15f   : > { %1666 = vpow2.f32 %v1411_v25 }
 0x160   : > { %1668 = vpow2.f32 %v1412_v26 }
 0x163   : > { %v1655_v27 = vpop.eup %1654 }
 0x164   : > { %v1657_v28 = vpop.eup %1656  ;;  %v836_v30 = vadd.f32 1.0, %v1655_v27 }
 0x165   : > { %v1659_v31 = vpop.eup %1658  ;;  %v837_v32 = vadd.f32 1.0, %v1657_v28 }
 0x166   : > { %v1661_v33 = vpop.eup %1660  ;;  %1670 = vrcp.f32 %v836_v30  ;;  %v858_v36 = vadd.f32 1.0, %v1659_v31 }
 0x167   : > { %1672 = vrcp.f32 %v837_v32  ;;  %v859_v37 = vadd.f32 1.0, %v1661_v33  ;;  %v1663_v6 = vpop.eup %1662 }
 0x168   : > { %1674 = vrcp.f32 %v858_v36  ;;  %v1665_v14 = vpop.eup %1664 }
 0x169   : > { %1676 = vrcp.f32 %v859_v37  ;;  %v1667_v19 = vpop.eup %1666 }
 0x16a   : > { %v1669_v45 = vpop.eup %1668  ;;  %v892_v50 = vadd.f32 1.0, %v1667_v19 }
 0x16b   : > { %v893_v53 = vadd.f32 1.0, %v1669_v45 }
 0x16c   : > { %1678 = vrcp.f32 %v892_v50 }
 0x16d   : > { %1680 = vrcp.f32 %v893_v53 }
 0x170   : > { %v1671_v47 = vpop.eup %1670 }
 0x171   : > { %v1673_v49 = vpop.eup %1672  ;;  %v906_v51 = vmul.f32 %v1671_v47, %v1663_v6 }
 0x172   : > { %v1675_v52 = vpop.eup %1674  ;;  %v907_v54 = vmul.f32 %v1673_v49, %v1665_v14 }
 0x173   : > { %v1677_v55 = vpop.eup %1676  ;;  %v904_v56 = vmul.f32 %v1675_v52, %v900_v46 }
 0x174   : > { %v905_v57 = vmul.f32 %v1677_v55, %v901_v48 }
 0x175   : > { %v2236_v40 = vadd.f32 %v906_v51, %v904_v56 }
 0x176   : > { %v2238_v42 = vadd.f32 %v907_v54, %v905_v57  ;;  %v1679_v44 = vpop.eup %1678 }
 0x177   : > { %1682 = vtanh.f32 %v2236_v40  ;;  %v1681_v61 = vpop.eup %1680 }
 0x178   : > { %1684 = vtanh.f32 %v2238_v42 }
 0x181   : > { %v1683_v63 = vpop.eup %1682 }
 0x182   : > { %v1685_v0 = vpop.eup %1684  ;;  %v912_v1 = vmul.f32 %v1683_v63, %v1679_v44 }
 0x183   : > { %v913_v2 = vmul.f32 %v1685_v0, %v1681_v61 }
 0x184   : > { %v936_v3 = vmul.f32 %v912_v1, %v2050_v8  ;;  %v958_v4 = vmul.f32 %v912_v1, %v2052_v9  ;;  %v992_v21 = vmul.f32 %v912_v1, %v2067_v23  ;;  %v980_v30 = vmul.f32 %v912_v1, %v2074_v34 }
 0x185   : > { %v916_v5 = vcombine.high %v912_v1, %v913_v2  ;;  %v937_v10 = vmul.f32 %v913_v2, %v2050_v8  ;;  %v959_v11 = vmul.f32 %v913_v2, %v2052_v9  ;;  %v993_v25 = vmul.f32 %v913_v2, %v2067_v23 }
 0x186   : > { %v940_v12 = vrot.slane %v936_v3, 7  ;;  %v962_v13 = vrot.slane %v958_v4, 7  ;;  %v981_v33 = vmul.f32 %v913_v2, %v2074_v34  ;;  %v996_v14 = vrot.slane %v992_v21, 7 }
 0x187   : > { %v923_v58 = vrot.slane %v916_v5, %v2098_v29  ;;  %v941_v59 = vrot.slane %v937_v10, 7  ;;  %v963_v20 = vrot.slane %v959_v11, 7  ;;  %v997_v19 = vrot.slane %v993_v25, 7 }
 0x188   : > { %v944_v22 = vadd.f32 %v940_v12, %v2057_v15  ;;  %v966_v24 = vadd.f32 %v962_v13, %v2061_v17  ;;  %v984_v45 = vrot.slane %v980_v30, 7  ;;  %v985_v46 = vrot.slane %v981_v33, 7 }
 0x189   : > { %v924_v26 = vcombine.high %v923_v58, %v923_v58  ;;  %v945_v27 = vadd.f32 %v941_v59, %v2059_v16  ;;  %v967_v28 = vadd.f32 %v963_v20, %v2063_v18  ;;  %v1000_v47 = vadd.f32 %v996_v14, %v2076_v35 }
 0x18a   : > { %v1413_v31 = vmul.f32 -1.442695, %v944_v22  ;;  %v1415_v32 = vmul.f32 -1.442695, %v966_v24  ;;  %v1001_v48 = vadd.f32 %v997_v19, %v2079_v38  ;;  %v988_v49 = vadd.f32 %v984_v45, %v2081_v39 }
 0x18b   : > { %v931_v36 = vrot.slane %v924_v26, %v2098_v29  ;;  %v1414_v37 = vmul.f32 -1.442695, %v945_v27  ;;  %v1416_v6 = vmul.f32 -1.442695, %v967_v28  ;;  %v989_v50 = vadd.f32 %v985_v46, %v2084_v41 }
 0x18c   : > { %1686 = vpow2.f32 %v1413_v31  ;;  %v1417_v51 = vmul.f32 -1.442695, %v1000_v47  ;;  %v1418_v52 = vmul.f32 -1.442695, %v1001_v48  ;;  %v1016_v1 = vrot.slane %v2236_v40, 7 }
 0x18d   : > { %934 = vst.msk [vmem:[#allocation2 + $0x5] ss:$8 sm:$0x3] %vm2104_vm0, %v931_v36  ;;  %1688 = vpow2.f32 %v1414_v37  ;;  %v1017_v3 = vrot.slane %v2238_v42, 7 }
 0x18e   : > { %1690 = vpow2.f32 %v1415_v32 }
 0x18f   : > { %1692 = vpow2.f32 %v1416_v6 }
 0x190   : > { %1694 = vtanh.f32 %v988_v49 }
 0x191   : > { %1696 = vtanh.f32 %v989_v50 }
 0x192   : > { %1698 = vpow2.f32 %v1417_v51 }
 0x193   : > { %1700 = vpow2.f32 %v1418_v52 }
 0x196   : > { %v1687_v53 = vpop.eup %1686 }
 0x197   : > { %v1689_v54 = vpop.eup %1688  ;;  %v952_v55 = vadd.f32 1.0, %v1687_v53 }
 0x198   : > { %v1691_v56 = vpop.eup %1690  ;;  %v953_v57 = vadd.f32 1.0, %v1689_v54 }
 0x199   : > { %v1693_v7 = vpop.eup %1692  ;;  %1702 = vrcp.f32 %v952_v55  ;;  %v974_v44 = vadd.f32 1.0, %v1691_v56 }
 0x19a   : > { %1704 = vrcp.f32 %v953_v57  ;;  %v975_v60 = vadd.f32 1.0, %v1693_v7  ;;  %v1695_v61 = vpop.eup %1694 }
 0x19b   : > { %1706 = vrcp.f32 %v974_v44  ;;  %v1697_v62 = vpop.eup %1696 }
 0x19c   : > { %1708 = vrcp.f32 %v975_v60  ;;  %v1699_v63 = vpop.eup %1698 }
 0x19d   : > { %v1701_v0 = vpop.eup %1700  ;;  %v1008_v5 = vadd.f32 1.0, %v1699_v63 }
 0x19e   : > { %v1009_v12 = vadd.f32 1.0, %v1701_v0 }
 0x19f   : > { %1710 = vrcp.f32 %v1008_v5 }
 0x1a0   : > { %1712 = vrcp.f32 %v1009_v12 }
 0x1a3   : > { %v1703_v2 = vpop.eup %1702 }
 0x1a4   : > { %v1705_v4 = vpop.eup %1704  ;;  %v1022_v10 = vmul.f32 %v1703_v2, %v1695_v61 }
 0x1a5   : > { %v1707_v11 = vpop.eup %1706  ;;  %v1023_v13 = vmul.f32 %v1705_v4, %v1697_v62 }
 0x1a6   : > { %v1709_v58 = vpop.eup %1708  ;;  %v1020_v59 = vmul.f32 %v1707_v11, %v1016_v1 }
 0x1a7   : > { %v1021_v20 = vmul.f32 %v1709_v58, %v1017_v3 }
 0x1a8   : > { %v2267_v21 = vadd.f32 %v1022_v10, %v1020_v59 }
 0x1a9   : > { %v2269_v22 = vadd.f32 %v1023_v13, %v1021_v20  ;;  %v1711_v40 = vpop.eup %1710 }
 0x1aa   : > { %1714 = vtanh.f32 %v2267_v21  ;;  %v1713_v42 = vpop.eup %1712  ;;  %v1132_v5 = vrot.slane %v2267_v21, 7 }
 0x1ab   : > { %1716 = vtanh.f32 %v2269_v22  ;;  %v1133_v11 = vrot.slane %v2269_v22, 7 }
 0x1b4   : > { %v1715_v24 = vpop.eup %1714 }
 0x1b5   : > { %v1717_v25 = vpop.eup %1716  ;;  %v1028_v26 = vmul.f32 %v1715_v24, %v1711_v40 }
 0x1b6   : > { %v1029_v27 = vmul.f32 %v1717_v25, %v1713_v42 }
 0x1b7   : > { %v1052_v28 = vmul.f32 %v1028_v26, %v2050_v8  ;;  %v1074_v30 = vmul.f32 %v1028_v26, %v2052_v9  ;;  %v1108_v45 = vmul.f32 %v1028_v26, %v2067_v23  ;;  %v1096_v50 = vmul.f32 %v1028_v26, %v2074_v34 }
 0x1b8   : > { %v1032_v31 = vcombine.high %v1028_v26, %v1029_v27  ;;  %v1053_v32 = vmul.f32 %v1029_v27, %v2050_v8  ;;  %v1075_v33 = vmul.f32 %v1029_v27, %v2052_v9  ;;  %v1109_v48 = vmul.f32 %v1029_v27, %v2067_v23 }
 0x1b9   : > { %v1056_v36 = vrot.slane %v1052_v28, 7  ;;  %v1078_v37 = vrot.slane %v1074_v30, 7  ;;  %v1097_v53 = vmul.f32 %v1029_v27, %v2074_v34  ;;  %v1100_v23 = vrot.slane %v1096_v50, 7 }
 0x1ba   : > { %v1039_v6 = vrot.slane %v1032_v31, %v2098_v29  ;;  %v1057_v14 = vrot.slane %v1053_v32, 7  ;;  %v1079_v19 = vrot.slane %v1075_v33, 7 }
 0x1bb   : > { %v1060_v46 = vadd.f32 %v1056_v36, %v2057_v15  ;;  %v1082_v47 = vadd.f32 %v1078_v37, %v2061_v17  ;;  %v1112_v15 = vrot.slane %v1108_v45, 7  ;;  %v1113_v17 = vrot.slane %v1109_v48, 7 }
 0x1bc   : > { %v1046_v49 = vrot.slane %v1039_v6, %v2098_v29  ;;  %v1061_v8 = vadd.f32 %v1057_v14, %v2059_v16  ;;  %v1083_v9 = vadd.f32 %v1079_v19, %v2063_v18  ;;  %v1101_v16 = vrot.slane %v1097_v53, 7 }
 0x1bd   : > { %v1419_v51 = vmul.f32 -1.442695, %v1060_v46  ;;  %v1421_v52 = vmul.f32 -1.442695, %v1082_v47  ;;  %v1116_v18 = vadd.f32 %v1112_v15, %v2076_v35  ;;  %v1117_v57 = vadd.f32 %v1113_v17, %v2079_v38  ;;  %v1171_v46 = vld [vmem:[%s2353_s2] sm:$0xf] }
 0x1be   : > { %v1047_v54 = vcombine.high %v1046_v49, %v1046_v49  ;;  %v1420_v55 = vmul.f32 -1.442695, %v1061_v8  ;;  %v1422_v56 = vmul.f32 -1.442695, %v1083_v9  ;;  %v1104_v34 = vadd.f32 %v1100_v23, %v2081_v39 }
 0x1bf   : > { %1718 = vpow2.f32 %v1419_v51  ;;  %v1105_v7 = vadd.f32 %v1101_v16, %v2084_v41  ;;  %v1423_v44 = vmul.f32 -1.442695, %v1116_v18  ;;  %v1424_v60 = vmul.f32 -1.442695, %v1117_v57 }
 0x1c0   : > { %1050 = vst.msk [vmem:[#allocation2 + $0x6] ss:$8 sm:$0x3] %vm2104_vm0, %v1047_v54  ;;  %1720 = vpow2.f32 %v1420_v55 }
 0x1c1   : > { %1722 = vpow2.f32 %v1421_v52 }
 0x1c2   : > { %1724 = vpow2.f32 %v1422_v56 }
 0x1c3   : > { %1726 = vtanh.f32 %v1104_v34 }
 0x1c4   : > { %1728 = vtanh.f32 %v1105_v7 }
 0x1c5   : > { %1730 = vpow2.f32 %v1423_v44 }
 0x1c6   : > { %1732 = vpow2.f32 %v1424_v60 }
 0x1c9   : > { %v1719_v61 = vpop.eup %1718 }
 0x1ca   : > { %v1721_v62 = vpop.eup %1720  ;;  %v1068_v63 = vadd.f32 1.0, %v1719_v61 }
 0x1cb   : > { %v1723_v0 = vpop.eup %1722  ;;  %v1069_v1 = vadd.f32 1.0, %v1721_v62 }
 0x1cc   : > { %v1725_v2 = vpop.eup %1724  ;;  %1734 = vrcp.f32 %v1068_v63  ;;  %v1090_v35 = vadd.f32 1.0, %v1723_v0 }
 0x1cd   : > { %1736 = vrcp.f32 %v1069_v1  ;;  %v1091_v38 = vadd.f32 1.0, %v1725_v2  ;;  %v1727_v39 = vpop.eup %1726 }
 0x1ce   : > { %1738 = vrcp.f32 %v1090_v35  ;;  %v1729_v41 = vpop.eup %1728 }
 0x1cf   : > { %1740 = vrcp.f32 %v1091_v38  ;;  %v1731_v3 = vpop.eup %1730 }
 0x1d0   : > { %v1733_v4 = vpop.eup %1732  ;;  %v1124_v13 = vadd.f32 1.0, %v1731_v3 }
 0x1d1   : > { %v1125_v20 = vadd.f32 1.0, %v1733_v4 }
 0x1d2   : > { %1742 = vrcp.f32 %v1124_v13 }
 0x1d3   : > { %1744 = vrcp.f32 %v1125_v20 }
 0x1d6   : > { %v1735_v10 = vpop.eup %1734 }
 0x1d7   : > { %v1737_v12 = vpop.eup %1736  ;;  %v1138_v58 = vmul.f32 %v1735_v10, %v1727_v39 }
 0x1d8   : > { %v1739_v59 = vpop.eup %1738  ;;  %v1139_v40 = vmul.f32 %v1737_v12, %v1729_v41 }
 0x1d9   : > { %v1741_v42 = vpop.eup %1740  ;;  %v1136_v24 = vmul.f32 %v1739_v59, %v1132_v5 }
 0x1da   : > { %v1137_v25 = vmul.f32 %v1741_v42, %v1133_v11 }
 0x1db   : > { %v1140_v26 = vadd.f32 %v1138_v58, %v1136_v24  ;;  %v1176_v47 = vpop.permute.xlu0 %1175 }
 0x1dc   : > { %v1141_v27 = vadd.f32 %v1139_v40, %v1137_v25  ;;  %v1743_v28 = vpop.eup %1742 }
 0x1dd   : > { %1746 = vtanh.f32 %v1140_v26  ;;  %v1745_v21 = vpop.eup %1744 }
 0x1de   : > { %1748 = vtanh.f32 %v1141_v27 }
 0x1e7   : > { %v1747_v30 = vpop.eup %1746 }
 0x1e8   : > { %v1749_v31 = vpop.eup %1748  ;;  %v1144_v22 = vmul.f32 %v1747_v30, %v1743_v28 }
 0x1e9   : > { %v1145_v32 = vmul.f32 %v1749_v31, %v1745_v21 }
 0x1eb   : > { %v1148_v33 = vcombine.high %v1144_v22, %v1145_v32 }
 0x1ed   : > { %v1155_v36 = vrot.slane %v1148_v33, %v2098_v29 }
 0x1ef   : > { %v1156_v37 = vcombine.high %v1155_v36, %v1155_v36 }
 0x1f1   : > { %v1163_v6 = vrot.slane %v1156_v37, %v2098_v29 }
 0x1f3   : > { %v1164_v14 = vcombine.high %v1163_v6, %v1163_v6 }
 0x1f5   : > { %1167 = vst.msk [vmem:[#allocation2 + $0x7] ss:$8 sm:$0x3] %vm2104_vm0, %v1164_v14 }
 0x1fc   : > { %v1170_v19 = vld [vmem:[#allocation2 + $0x8] sm:$0xff]  ;;  %v1169_v45 = vld [vmem:[#allocation2] sm:$0xff] }
 0x1fd   : > { %1182 = vmatprep.subr.mxu0 %v1170_v19 }
 0x1fe   : > { %1183 = vmatpush1.msra.mxu0 %v1169_v45 }
 0x1ff   : > { %1425 = vmatmul.mubr.msk.f32.vlgmr.msra.gmra.mrb[0].mxu0 %vm1178_vm1, %v1171_v46 }
 0x2d2   : > { %v1248_v48 = vpop.f32.mrb[0].mxu0 }
 0x2d3   : > { %v1249_v29 = vadd.f32 %v1248_v48, %v1176_v47  ;;  %v1250_v49 = vpop.f32.mrb[1].mxu0 }
 0x2d4   : > { %v1251_v43 = vadd.f32 %v1250_v49, %v1176_v47 }
 0x2d6   : > { %v1255_v8 = vcombine.low %v1249_v29, %v1251_v43 }
 0x2d8   : > { %1257 = vst [vmem:[%s227_s24] sm:$0xff] %v1255_v8 }
 0x2d9   : > { %1808 = shalt.err (!%p1805_p5)
}
 0x2da   : > { %s1809_s23 = scalar_lea.hbm %s2307_s7, 128  ;;  %s1813_s29 = scalar_lea.hbm %s2355_s4, 256 }
 0x2db   : > { %p1810_p10 = scmp.ne.s32.totalorder %s2307_s7, %s1809_s23  ;;  %p1814_p6 = scmp.lt.u32.totalorder %s2307_s7, %s2355_s4 }
 0x2dc   : > { %p1815_p13 = scmp.lt.u32.totalorder %s1813_s29, %s1809_s23  ;;  %p1817_p8 = scmp.lt.u32.totalorder %s1809_s23, %s2307_s7 }
 0x2dd   : > { %p1811_p2 = pnand %p1810_p10, %p2372_p9 }
 0x2de   : > { %p1816_p4 = por %p1815_p13, %p1814_p6 }
 0x2df   : > { %p1812_p1 = pneg %p1811_p2 }
 0x2e0   : > { %p1818_p11 = por %p1817_p8, %p1816_p4 }
 0x2e2   : > { %p1819_p7 = pnand %p1818_p11, %p1812_p1 }
 0x2e4   : > { %1822 = shalt.err (!%p1819_p7)
}
 0x2e5   : > { %1439 = dma.vmem_to_hbm [thread:$0]  (%p2372_p9), %s2309_s28, 128, %s2307_s7, %s1259_s11  }
 0x2e6 PF: > { %s1285_s26 = sand.u32 1, %s1853_s15   ;;  %p2373_p0 = scmp.ne.s32.totalorder %s2360_s22, 0 }
 0x2e7   : > { %p2374_p3 = scmp.ge.s32.totalorder %s1865_s18, 2  ;;  %s1286_s20 = scalar_lea.sflag [#allocation5], %s1285_s26 }
 0x2e9   : > { %p1450_p12 = pnand %p2374_p3, %p2373_p0 }
 0x2eb   : > { %1848 = dma.done.wait (!%p1450_p12), %s1286_s20, 128  }
 0x2ec   : > { %1850 = vsyncadd (!%p1450_p12), %s1286_s20, 4294967168  ;;  %p18_p5 = scmp.ge.s32.totalorder %s1949_s27, 4   ;;  %s2375_s15 = smov %s1857_s16 }
 0x2ed   : > { %s2376_s16 = smov %s1861_s17  ;;  %s2377_s17 = smov %s1973_s8 }
 0x2ee   : > { %s2378_s18 = smov %s1949_s27  ;;  %20 = sbr.rel (!%p18_p5) target bundleno = 6 (0x6), region = 93 }
 0x2f5   :  { %1291 = vsyncpa [#allocation4], 1 }
 0x2f6   :  { %1293 = vsyncpa [#allocation4 + $0x1], 1 }
 0x2f7   :  { %1294 = vsyncpa [#allocation5], 1 }
 0x2f8   :  { %1296 = vsyncpa [#allocation5 + $0x1], 1 }
 0x2f9   :  { %1297 = vsyncpa [#allocation6], 1 }
 0x2fa   :  { %1299 = vsyncpa [#allocation6 + $0x1], 1 }

</bundles_post_ra>
